<compile_context>
chip_gen: v5e
topology: v5e:2x2
jax: 0.10.0
libtpu: 0.0.40
codegen_flags: <defaults>
</compile_context>

<pallas_src>
import jax
import jax.numpy as jnp
from jax import lax
from jax.experimental import pallas as pl
from jax.experimental.pallas import tpu as pltpu

# ---- small synthetic ALBERT config -----------------------------------------
B, S = 2, 8            # batch, sequence length
VOCAB = 100
MAX_POS = 64
TYPE_VOCAB = 2
E = 16                 # ALBERT embedding size
H = 32                 # hidden size
NH = 2                 # attention heads
DH = H // NH
INTER = 64             # FFN intermediate size
C = 3                  # n_classes
C_PAD = 128            # lane-dense classifier output width
NUM_LAYERS = 2         # ALBERT repeats ONE shared layer this many times
EPS = 1e-12            # ALBERT LayerNorm eps

# ---- packed bf16 weight-slab row layout (all offsets multiples of 16 so
# every static slice is aligned to a full bf16 (16,128) vreg tile) ------------
R_EPW = 0              # emb_proj_w   (E, H)
R_QKV = R_EPW + E      # wqkv         (H, 3H)   1/sqrt(DH) folded into Q block
R_WO = R_QKV + H       # wo           (H, H)    sliced per head inside kernel
R_W1 = R_WO + H        # w1           (H, INTER)
R_W2 = R_W1 + H        # w2           (INTER, H)
R_PW = R_W2 + INTER    # pool_w       (H, H)
R_CW = R_PW + H        # cls_w        (H, C_PAD)
W_ROWS = R_CW + H      # = 240 rows, 128 lanes, bf16

# ---- packed f32 bias / LayerNorm slab row layout (one row per vector) -------
(PR_EG, PR_EB, PR_EPB, PR_BQKV, PR_BO, PR_AG, PR_AB,
 PR_B1, PR_B2, PR_FG, PR_FB, PR_PB, PR_CB) = range(13)
P_ROWS = 16            # padded to a full (8,128)-tile multiple


def _layer_norm(x, g, b):
    mu = jnp.mean(x, axis=-1, keepdims=True)
    var = jnp.mean((x - mu) ** 2, axis=-1, keepdims=True)
    return (x - mu) * jax.lax.rsqrt(var + EPS) * g + b


# ---- Pallas kernel ----------------------------------------------------------
def albert_kernel(emb_ref, mask_ref, w_ref, p_ref, out_ref):
    bf16 = jnp.bfloat16
    f32 = jnp.float32

    # -- static views into the packed slabs (no per-parameter DMAs) ----------
    epw = w_ref[R_EPW:R_EPW + E, :H]                 # (E, H)      bf16
    wqkv = w_ref[R_QKV:R_QKV + H, :3 * H]            # (H, 3H)     bf16
    w1 = w_ref[R_W1:R_W1 + H, :INTER]                # (H, INTER)  bf16
    w2 = w_ref[R_W2:R_W2 + INTER, :H]                # (INTER, H)  bf16
    pw = w_ref[R_PW:R_PW + H, :H]                    # (H, H)      bf16
    cw = w_ref[R_CW:R_CW + H, :C_PAD]                # (H, C_PAD)  bf16

    eg, eb = p_ref[PR_EG:PR_EG + 1, :E], p_ref[PR_EB:PR_EB + 1, :E]
    epb = p_ref[PR_EPB:PR_EPB + 1, :H]
    bqkv = p_ref[PR_BQKV:PR_BQKV + 1, :3 * H]
    bo = p_ref[PR_BO:PR_BO + 1, :H]
    ag, ab = p_ref[PR_AG:PR_AG + 1, :H], p_ref[PR_AB:PR_AB + 1, :H]
    b1 = p_ref[PR_B1:PR_B1 + 1, :INTER]
    b2 = p_ref[PR_B2:PR_B2 + 1, :H]
    fg, fb = p_ref[PR_FG:PR_FG + 1, :H], p_ref[PR_FB:PR_FB + 1, :H]
    pb = p_ref[PR_PB:PR_PB + 1, :H]
    cb = p_ref[PR_CB:PR_CB + 1, :C_PAD]

    mask_bias = mask_ref[...]                        # (B, 1, S) f32

    # Embedding LayerNorm + embedding_hidden_mapping_in, all B*S rows at once.
    x = _layer_norm(emb_ref[...], eg, eb)            # (BS, E) f32
    h = jnp.dot(x.astype(bf16), epw,
                preferred_element_type=f32) + epb    # (BS, H) f32

    # ALBERT: the SAME layer weights reused NUM_LAYERS times.
    for _ in range(NUM_LAYERS):
        # Fused QKV projection: one (BS,H) x (H,3H) MXU pass (scale folded in).
        qkv = jnp.dot(h.astype(bf16), wqkv,
                      preferred_element_type=f32) + bqkv   # (BS, 3H)
        qkv = qkv.reshape(B, S, 3 * H)

        attn = None                                   # (B, S, H) accumulator
        for hh in range(NH):
            qh = qkv[:, :, hh * DH:(hh + 1) * DH].astype(bf16)           # (B,S,DH)
            kh = qkv[:, :, H + hh * DH:H + (hh + 1) * DH].astype(bf16)
            vh = qkv[:, :, 2 * H + hh * DH:2 * H + (hh + 1) * DH].astype(bf16)

            # Scores: batched dot, contract last dims directly.
            s = lax.dot_general(qh, kh, (((2,), (2,)), ((0,), (0,))),
                                preferred_element_type=f32)              # (B,S,S)
            s = s + mask_bias
            s = s - jnp.max(s, axis=-1, keepdims=True)
            p = jnp.exp(s)
            p = p * pl.reciprocal(jnp.sum(p, axis=-1, keepdims=True), approx=True)

            ctx_h = lax.dot_general(p.astype(bf16), vh,
                                    (((2,), (1,)), ((0,), (0,))),
                                    preferred_element_type=f32)          # (B,S,DH)

            # Fold the output projection: ctx_h @ wo[hh*DH:(hh+1)*DH, :].
            wo_h = w_ref[R_WO + hh * DH:R_WO + (hh + 1) * DH, :H]        # (DH, H)
            contrib = lax.dot_general(ctx_h.astype(bf16), wo_h,
                                      (((2,), (0,)), ((), ())),
                                      preferred_element_type=f32)        # (B,S,H)
            attn = contrib if attn is None else attn + contrib

        attn = attn.reshape(B * S, H) + bo
        h = _layer_norm(h + attn, ag, ab)

        ff = jnp.dot(h.astype(bf16), w1, preferred_element_type=f32) + b1
        ff = jax.nn.gelu(ff, approximate=True)        # ALBERT gelu_new
        ff = jnp.dot(ff.astype(bf16), w2, preferred_element_type=f32) + b2
        h = _layer_norm(h + ff, fg, fb)

    # Pooler on all CLS tokens at once, then classifier (lane-dense padded out).
    cls = h.reshape(B, S, H)[:, 0, :]                                     # (B, H)
    pooled = jnp.tanh(jnp.dot(cls.astype(bf16), pw,
                              preferred_element_type=f32) + pb)
    # TODO(synk): nn.Dropout(p=0.5) is identity in eval mode; training-mode
    # stochastic dropout (pltpu PRNG) omitted.
    out_ref[...] = jnp.dot(pooled.astype(bf16), cw,
                           preferred_element_type=f32) + cb               # (B, 128)


# ---- parameters / one-time packing / per-call glue ---------------------------
def init_params(key):
    ks = list(jax.random.split(key, 20))
    n = lambda k, shape: (0.02 * jax.random.normal(k, shape, jnp.float32))
    return {
        "word_emb": n(ks[0], (VOCAB, E)),
        "pos_emb": n(ks[1], (MAX_POS, E)),
        "type_emb": n(ks[2], (TYPE_VOCAB, E)),
        "emb_ln_g": jnp.ones((1, E), jnp.float32),
        "emb_ln_b": jnp.zeros((1, E), jnp.float32),
        "emb_proj_w": n(ks[3], (E, H)),
        "emb_proj_b": jnp.zeros((1, H), jnp.float32),
        "wq": n(ks[4], (H, H)), "bq": jnp.zeros((1, H), jnp.float32),
        "wk": n(ks[5], (H, H)), "bk": jnp.zeros((1, H), jnp.float32),
        "wv": n(ks[6], (H, H)), "bv": jnp.zeros((1, H), jnp.float32),
        "wo": n(ks[7], (H, H)), "bo": jnp.zeros((1, H), jnp.float32),
        "attn_ln_g": jnp.ones((1, H), jnp.float32),
        "attn_ln_b": jnp.zeros((1, H), jnp.float32),
        "w1": n(ks[8], (H, INTER)), "b1": jnp.zeros((1, INTER), jnp.float32),
        "w2": n(ks[9], (INTER, H)), "b2": jnp.zeros((1, H), jnp.float32),
        "ffn_ln_g": jnp.ones((1, H), jnp.float32),
        "ffn_ln_b": jnp.zeros((1, H), jnp.float32),
        "pool_w": n(ks[10], (H, H)), "pool_b": jnp.zeros((1, H), jnp.float32),
        "cls_w": n(ks[11], (H, C)), "cls_b": jnp.zeros((1, C), jnp.float32),
    }


def prepare_params(params):
    """One-time packing: weight/bias slabs (executed once, NOT per forward)."""
    f32 = jnp.float32
    scale = 1.0 / (DH ** 0.5)          # exact fold: DH=16 -> power-of-two scale
    wqkv = jnp.concatenate(
        [params["wq"] * scale, params["wk"], params["wv"]], axis=1)       # (H,3H)
    bqkv = jnp.concatenate(
        [params["bq"] * scale, params["bk"], params["bv"]], axis=1)       # (1,3H)
    cls_w_pad = jnp.zeros((H, C_PAD), f32).at[:, :C].set(params["cls_w"])
    cls_b_pad = jnp.zeros((1, C_PAD), f32).at[:, :C].set(params["cls_b"])

    def put(slab, row, mat):
        r, c = mat.shape
        return slab.at[row:row + r, :c].set(mat)

    wslab = jnp.zeros((W_ROWS, 128), f32)
    wslab = put(wslab, R_EPW, params["emb_proj_w"])
    wslab = put(wslab, R_QKV, wqkv)
    wslab = put(wslab, R_WO, params["wo"])
    wslab = put(wslab, R_W1, params["w1"])
    wslab = put(wslab, R_W2, params["w2"])
    wslab = put(wslab, R_PW, params["pool_w"])
    wslab = put(wslab, R_CW, cls_w_pad)
    wslab = wslab.astype(jnp.bfloat16)

    pslab = jnp.zeros((P_ROWS, 128), f32)
    pslab = put(pslab, PR_EG, params["emb_ln_g"])
    pslab = put(pslab, PR_EB, params["emb_ln_b"])
    pslab = put(pslab, PR_EPB, params["emb_proj_b"])
    pslab = put(pslab, PR_BQKV, bqkv)
    pslab = put(pslab, PR_BO, params["bo"])
    pslab = put(pslab, PR_AG, params["attn_ln_g"])
    pslab = put(pslab, PR_AB, params["attn_ln_b"])
    pslab = put(pslab, PR_B1, params["b1"])
    pslab = put(pslab, PR_B2, params["b2"])
    pslab = put(pslab, PR_FG, params["ffn_ln_g"])
    pslab = put(pslab, PR_FB, params["ffn_ln_b"])
    pslab = put(pslab, PR_PB, params["pool_b"])
    pslab = put(pslab, PR_CB, cls_b_pad)

    return {"word_emb": params["word_emb"], "pos_emb": params["pos_emb"],
            "type_emb": params["type_emb"], "wslab": wslab, "pslab": pslab}


def _kernel_inputs(packed, input_ids, attention_mask):
    """Per-call work only: embedding gather/sum and attention bias."""
    f32 = jnp.float32
    word_e = packed["word_emb"][input_ids]                               # (B,S,E)
    pos_e = packed["pos_emb"][jnp.arange(S)][None, :, :]                 # (1,S,E)
    typ_e = packed["type_emb"][jnp.zeros((B, S), jnp.int32)]             # (B,S,E)
    emb_sum = (word_e + pos_e + typ_e).reshape(B * S, E)                 # (BS,E)
    attn_bias = (1.0 - attention_mask.astype(f32))[:, None, :] * -10000.0  # (B,1,S)
    return emb_sum, attn_bias


def albert_classifier_forward(packed, input_ids, attention_mask):
    emb_sum, attn_bias = _kernel_inputs(packed, input_ids, attention_mask)
    logits_pad = pl.pallas_call(
        albert_kernel,
        out_shape=jax.ShapeDtypeStruct((B, C_PAD), jnp.float32),
        in_specs=[pl.BlockSpec(memory_space=pltpu.MemorySpace.VMEM)] * 4,
        out_specs=pl.BlockSpec(memory_space=pltpu.MemorySpace.VMEM),
    )(emb_sum, attn_bias, packed["wslab"], packed["pslab"])
    return logits_pad[:, :C]


# ---- pure-JAX reference (original module structure, bf16 MXU mirroring) -----
def reference_forward(params, input_ids, attention_mask):
    bf16, f32 = jnp.bfloat16, jnp.float32

    def mm(a, w):
        return jnp.dot(a.astype(bf16), w.astype(bf16), preferred_element_type=f32)

    word_e = params["word_emb"][input_ids]
    pos_e = params["pos_emb"][jnp.arange(S)][None, :, :]
    typ_e = params["type_emb"][jnp.zeros((B, S), jnp.int32)]
    emb = word_e + pos_e + typ_e
    attn_bias = (1.0 - attention_mask.astype(f32))[:, None, :] * -10000.0
    outs = []
    for b_idx in range(B):
        x = _layer_norm(emb[b_idx], params["emb_ln_g"], params["emb_ln_b"])
        h = mm(x, params["emb_proj_w"]) + params["emb_proj_b"]
        for _ in range(NUM_LAYERS):
            q = mm(h, params["wq"]) + params["bq"]
            k = mm(h, params["wk"]) + params["bk"]
            v = mm(h, params["wv"]) + params["bv"]
            heads = []
            for hh in range(NH):
                sl = slice(hh * DH, (hh + 1) * DH)
                s = jnp.dot(q[:, sl].astype(bf16), k[:, sl].astype(bf16).T,
                            preferred_element_type=f32) / (DH ** 0.5)
                s = s + attn_bias[b_idx]
                p = jax.nn.softmax(s, axis=-1)
                heads.append(jnp.dot(p.astype(bf16), v[:, sl].astype(bf16),
                                     preferred_element_type=f32))
            ctx = jnp.concatenate(heads, axis=-1)
            h = _layer_norm(h + mm(ctx, params["wo"]) + params["bo"],
                            params["attn_ln_g"], params["attn_ln_b"])
            ff = jax.nn.gelu(mm(h, params["w1"]) + params["b1"], approximate=True)
            ff = mm(ff, params["w2"]) + params["b2"]
            h = _layer_norm(h + ff, params["ffn_ln_g"], params["ffn_ln_b"])
        pooled = jnp.tanh(mm(h[0:1], params["pool_w"]) + params["pool_b"])
        outs.append(mm(pooled, params["cls_w"]) + params["cls_b"])
    return jnp.concatenate(outs, axis=0)


if __name__ == "__main__":
    key = jax.random.PRNGKey(0)
    k_param, k_ids = jax.random.split(key)
    params = init_params(k_param)
    packed = prepare_params(params)          # one-time weight packing (hoisted)

    input_ids = jax.random.randint(k_ids, (B, S), 0, VOCAB, dtype=jnp.int32)
    attention_mask = jnp.array(
        [[1, 1, 1, 1, 1, 1, 1, 1],
         [1, 1, 1, 1, 1, 0, 0, 0]], dtype=jnp.int32)

    logits = albert_classifier_forward(packed, input_ids, attention_mask)
    jax.block_until_ready(logits)

    ref = reference_forward(params, input_ids, attention_mask)
    assert logits.shape == (B, C)
    assert jnp.allclose(logits, ref, rtol=2e-2, atol=2e-2), (logits, ref)
    print("KERNEL_OK")
</pallas_src>

<mosaic_0001>
module attributes {stable_mosaic.version = 11 : i64} {
  func.func @albert_kernel(%arg0: memref<16x16xf32, #tpu.memory_space<vmem>>, %arg1: memref<2x1x8xf32, #tpu.memory_space<vmem>>, %arg2: memref<240x128xbf16, #tpu.memory_space<vmem>>, %arg3: memref<16x128xf32, #tpu.memory_space<vmem>>, %arg4: memref<2x128xf32, #tpu.memory_space<vmem>>) attributes {dimension_semantics = [], scalar_prefetch = 0 : i64, scratch_operands = 0 : i64, tpu.core_type = #tpu.core_type<tc>} {
    %c0 = arith.constant 0 : index
    %c0_0 = arith.constant 0 : index
    %0 = vector.load %arg2[%c0, %c0_0] : memref<240x128xbf16, #tpu.memory_space<vmem>>, vector<16x32xbf16>
    %c16 = arith.constant 16 : index
    %c0_1 = arith.constant 0 : index
    %1 = vector.load %arg2[%c16, %c0_1] : memref<240x128xbf16, #tpu.memory_space<vmem>>, vector<32x96xbf16>
    %c80 = arith.constant 80 : index
    %c0_2 = arith.constant 0 : index
    %2 = vector.load %arg2[%c80, %c0_2] : memref<240x128xbf16, #tpu.memory_space<vmem>>, vector<32x64xbf16>
    %c112 = arith.constant 112 : index
    %c0_3 = arith.constant 0 : index
    %3 = vector.load %arg2[%c112, %c0_3] : memref<240x128xbf16, #tpu.memory_space<vmem>>, vector<64x32xbf16>
    %c176 = arith.constant 176 : index
    %c0_4 = arith.constant 0 : index
    %4 = vector.load %arg2[%c176, %c0_4] : memref<240x128xbf16, #tpu.memory_space<vmem>>, vector<32x32xbf16>
    %c208 = arith.constant 208 : index
    %c0_5 = arith.constant 0 : index
    %5 = vector.load %arg2[%c208, %c0_5] : memref<240x128xbf16, #tpu.memory_space<vmem>>, vector<32x128xbf16>
    %c0_6 = arith.constant 0 : index
    %c0_7 = arith.constant 0 : index
    %6 = vector.load %arg3[%c0_6, %c0_7] : memref<16x128xf32, #tpu.memory_space<vmem>>, vector<1x16xf32>
    %c1 = arith.constant 1 : index
    %c0_8 = arith.constant 0 : index
    %7 = vector.load %arg3[%c1, %c0_8] : memref<16x128xf32, #tpu.memory_space<vmem>>, vector<1x16xf32>
    %c2 = arith.constant 2 : index
    %c0_9 = arith.constant 0 : index
    %8 = vector.load %arg3[%c2, %c0_9] : memref<16x128xf32, #tpu.memory_space<vmem>>, vector<1x32xf32>
    %c3 = arith.constant 3 : index
    %c0_10 = arith.constant 0 : index
    %9 = vector.load %arg3[%c3, %c0_10] : memref<16x128xf32, #tpu.memory_space<vmem>>, vector<1x96xf32>
    %c4 = arith.constant 4 : index
    %c0_11 = arith.constant 0 : index
    %10 = vector.load %arg3[%c4, %c0_11] : memref<16x128xf32, #tpu.memory_space<vmem>>, vector<1x32xf32>
    %c5 = arith.constant 5 : index
    %c0_12 = arith.constant 0 : index
    %11 = vector.load %arg3[%c5, %c0_12] : memref<16x128xf32, #tpu.memory_space<vmem>>, vector<1x32xf32>
    %c6 = arith.constant 6 : index
    %c0_13 = arith.constant 0 : index
    %12 = vector.load %arg3[%c6, %c0_13] : memref<16x128xf32, #tpu.memory_space<vmem>>, vector<1x32xf32>
    %c7 = arith.constant 7 : index
    %c0_14 = arith.constant 0 : index
    %13 = vector.load %arg3[%c7, %c0_14] : memref<16x128xf32, #tpu.memory_space<vmem>>, vector<1x64xf32>
    %c8 = arith.constant 8 : index
    %c0_15 = arith.constant 0 : index
    %14 = vector.load %arg3[%c8, %c0_15] : memref<16x128xf32, #tpu.memory_space<vmem>>, vector<1x32xf32>
    %c9 = arith.constant 9 : index
    %c0_16 = arith.constant 0 : index
    %15 = vector.load %arg3[%c9, %c0_16] : memref<16x128xf32, #tpu.memory_space<vmem>>, vector<1x32xf32>
    %c10 = arith.constant 10 : index
    %c0_17 = arith.constant 0 : index
    %16 = vector.load %arg3[%c10, %c0_17] : memref<16x128xf32, #tpu.memory_space<vmem>>, vector<1x32xf32>
    %c11 = arith.constant 11 : index
    %c0_18 = arith.constant 0 : index
    %17 = vector.load %arg3[%c11, %c0_18] : memref<16x128xf32, #tpu.memory_space<vmem>>, vector<1x32xf32>
    %c12 = arith.constant 12 : index
    %c0_19 = arith.constant 0 : index
    %18 = vector.load %arg3[%c12, %c0_19] : memref<16x128xf32, #tpu.memory_space<vmem>>, vector<1x128xf32>
    %c0_20 = arith.constant 0 : index
    %c0_21 = arith.constant 0 : index
    %c0_22 = arith.constant 0 : index
    %19 = vector.load %arg1[%c0_20, %c0_21, %c0_22] : memref<2x1x8xf32, #tpu.memory_space<vmem>>, vector<2x1x8xf32>
    %c0_23 = arith.constant 0 : index
    %c0_24 = arith.constant 0 : index
    %20 = vector.load %arg0[%c0_23, %c0_24] : memref<16x16xf32, #tpu.memory_space<vmem>>, vector<16x16xf32>
    %cst = arith.constant dense<0.000000e+00> : vector<16xf32>
    %21 = vector.multi_reduction <add>, %20, %cst [1] : vector<16x16xf32> to vector<16xf32>
    %22 = vector.shape_cast %21 : vector<16xf32> to vector<16x1xf32>
    %cst_25 = arith.constant 1.600000e+01 : f32
    %23 = vector.broadcast %cst_25 : f32 to vector<16x1xf32>
    %24 = arith.divf %22, %23 : vector<16x1xf32>
    %25 = vector.broadcast %24 : vector<16x1xf32> to vector<16x16xf32>
    %26 = arith.subf %20, %25 : vector<16x16xf32>
    %27 = arith.mulf %26, %26 : vector<16x16xf32>
    %cst_26 = arith.constant dense<0.000000e+00> : vector<16xf32>
    %28 = vector.multi_reduction <add>, %27, %cst_26 [1] : vector<16x16xf32> to vector<16xf32>
    %29 = vector.shape_cast %28 : vector<16xf32> to vector<16x1xf32>
    %cst_27 = arith.constant 1.600000e+01 : f32
    %30 = vector.broadcast %cst_27 : f32 to vector<16x1xf32>
    %31 = arith.divf %29, %30 : vector<16x1xf32>
    %32 = vector.broadcast %24 : vector<16x1xf32> to vector<16x16xf32>
    %33 = arith.subf %20, %32 : vector<16x16xf32>
    %cst_28 = arith.constant 9.99999996E-13 : f32
    %34 = vector.broadcast %cst_28 : f32 to vector<16x1xf32>
    %35 = arith.addf %31, %34 : vector<16x1xf32>
    %36 = math.rsqrt %35 : vector<16x1xf32>
    %37 = vector.broadcast %36 : vector<16x1xf32> to vector<16x16xf32>
    %38 = arith.mulf %33, %37 : vector<16x16xf32>
    %39 = vector.broadcast %6 : vector<1x16xf32> to vector<16x16xf32>
    %40 = arith.mulf %38, %39 : vector<16x16xf32>
    %41 = vector.broadcast %7 : vector<1x16xf32> to vector<16x16xf32>
    %42 = arith.addf %40, %41 : vector<16x16xf32>
    %43 = arith.truncf %42 : vector<16x16xf32> to vector<16x16xbf16>
    %cst_29 = arith.constant dense<0.000000e+00> : vector<16x32xf32>
    %44 = tpu.matmul %43, %0, %cst_29 {dimension_numbers = #tpu.dot_dimension_numbers<[1], [0], [0], [1], [0, 0, 1, 1], [], []>} : vector<16x16xbf16>, vector<16x32xbf16>, vector<16x32xf32> -> vector<16x32xf32>
    %45 = vector.broadcast %8 : vector<1x32xf32> to vector<16x32xf32>
    %46 = arith.addf %44, %45 : vector<16x32xf32>
    %47 = arith.truncf %46 : vector<16x32xf32> to vector<16x32xbf16>
    %cst_30 = arith.constant dense<0.000000e+00> : vector<16x96xf32>
    %48 = tpu.matmul %47, %1, %cst_30 {dimension_numbers = #tpu.dot_dimension_numbers<[1], [0], [0], [1], [0, 0, 1, 1], [], []>} : vector<16x32xbf16>, vector<32x96xbf16>, vector<16x96xf32> -> vector<16x96xf32>
    %49 = vector.broadcast %9 : vector<1x96xf32> to vector<16x96xf32>
    %50 = arith.addf %48, %49 : vector<16x96xf32>
    %51 = vector.shape_cast %50 : vector<16x96xf32> to vector<2x8x96xf32>
    %52 = vector.extract_strided_slice %51 {offsets = [0, 0, 0], sizes = [2, 8, 16], strides = [1, 1, 1]} : vector<2x8x96xf32> to vector<2x8x16xf32>
    %53 = arith.truncf %52 : vector<2x8x16xf32> to vector<2x8x16xbf16>
    %54 = vector.extract_strided_slice %51 {offsets = [0, 0, 32], sizes = [2, 8, 16], strides = [1, 1, 1]} : vector<2x8x96xf32> to vector<2x8x16xf32>
    %55 = arith.truncf %54 : vector<2x8x16xf32> to vector<2x8x16xbf16>
    %56 = vector.extract_strided_slice %51 {offsets = [0, 0, 64], sizes = [2, 8, 16], strides = [1, 1, 1]} : vector<2x8x96xf32> to vector<2x8x16xf32>
    %57 = arith.truncf %56 : vector<2x8x16xf32> to vector<2x8x16xbf16>
    %cst_31 = arith.constant dense<0.000000e+00> : vector<2x8x8xf32>
    %58 = tpu.matmul %53, %55, %cst_31 {dimension_numbers = #tpu.dot_dimension_numbers<[2], [2], [1], [1], [0, 0, 0, 1, 1, 1], [0], [0]>} : vector<2x8x16xbf16>, vector<2x8x16xbf16>, vector<2x8x8xf32> -> vector<2x8x8xf32>
    %59 = vector.broadcast %19 : vector<2x1x8xf32> to vector<2x8x8xf32>
    %60 = arith.addf %58, %59 : vector<2x8x8xf32>
    %cst_32 = arith.constant dense<0xFF800000> : vector<2x8xf32>
    %61 = vector.multi_reduction <maximumf>, %60, %cst_32 [2] : vector<2x8x8xf32> to vector<2x8xf32>
    %62 = vector.shape_cast %61 : vector<2x8xf32> to vector<2x8x1xf32>
    %63 = vector.broadcast %62 : vector<2x8x1xf32> to vector<2x8x8xf32>
    %64 = arith.subf %60, %63 : vector<2x8x8xf32>
    %65 = math.exp %64 : vector<2x8x8xf32>
    %cst_33 = arith.constant dense<0.000000e+00> : vector<2x8xf32>
    %66 = vector.multi_reduction <add>, %65, %cst_33 [2] : vector<2x8x8xf32> to vector<2x8xf32>
    %67 = vector.shape_cast %66 : vector<2x8xf32> to vector<2x8x1xf32>
    %68 = tpu.reciprocal %67 {approx = true} : vector<2x8x1xf32> -> vector<2x8x1xf32>
    %69 = vector.broadcast %68 : vector<2x8x1xf32> to vector<2x8x8xf32>
    %70 = arith.mulf %65, %69 : vector<2x8x8xf32>
    %71 = arith.truncf %70 : vector<2x8x8xf32> to vector<2x8x8xbf16>
    %cst_34 = arith.constant dense<0.000000e+00> : vector<2x8x16xf32>
    %72 = tpu.matmul %71, %57, %cst_34 {dimension_numbers = #tpu.dot_dimension_numbers<[2], [1], [1], [2], [0, 0, 0, 1, 1, 2], [0], [0]>} : vector<2x8x8xbf16>, vector<2x8x16xbf16>, vector<2x8x16xf32> -> vector<2x8x16xf32>
    %c48 = arith.constant 48 : index
    %c0_35 = arith.constant 0 : index
    %73 = vector.load %arg2[%c48, %c0_35] : memref<240x128xbf16, #tpu.memory_space<vmem>>, vector<16x32xbf16>
    %74 = arith.truncf %72 : vector<2x8x16xf32> to vector<2x8x16xbf16>
    %cst_36 = arith.constant dense<0.000000e+00> : vector<2x8x32xf32>
    %75 = tpu.matmul %74, %73, %cst_36 {dimension_numbers = #tpu.dot_dimension_numbers<[2], [0], [0, 1], [1], [0, 0, 0, 1, 1, 1], [], []>} : vector<2x8x16xbf16>, vector<16x32xbf16>, vector<2x8x32xf32> -> vector<2x8x32xf32>
    %76 = vector.extract_strided_slice %51 {offsets = [0, 0, 16], sizes = [2, 8, 16], strides = [1, 1, 1]} : vector<2x8x96xf32> to vector<2x8x16xf32>
    %77 = arith.truncf %76 : vector<2x8x16xf32> to vector<2x8x16xbf16>
    %78 = vector.extract_strided_slice %51 {offsets = [0, 0, 48], sizes = [2, 8, 16], strides = [1, 1, 1]} : vector<2x8x96xf32> to vector<2x8x16xf32>
    %79 = arith.truncf %78 : vector<2x8x16xf32> to vector<2x8x16xbf16>
    %80 = vector.extract_strided_slice %51 {offsets = [0, 0, 80], sizes = [2, 8, 16], strides = [1, 1, 1]} : vector<2x8x96xf32> to vector<2x8x16xf32>
    %81 = arith.truncf %80 : vector<2x8x16xf32> to vector<2x8x16xbf16>
    %cst_37 = arith.constant dense<0.000000e+00> : vector<2x8x8xf32>
    %82 = tpu.matmul %77, %79, %cst_37 {dimension_numbers = #tpu.dot_dimension_numbers<[2], [2], [1], [1], [0, 0, 0, 1, 1, 1], [0], [0]>} : vector<2x8x16xbf16>, vector<2x8x16xbf16>, vector<2x8x8xf32> -> vector<2x8x8xf32>
    %83 = vector.broadcast %19 : vector<2x1x8xf32> to vector<2x8x8xf32>
    %84 = arith.addf %82, %83 : vector<2x8x8xf32>
    %cst_38 = arith.constant dense<0xFF800000> : vector<2x8xf32>
    %85 = vector.multi_reduction <maximumf>, %84, %cst_38 [2] : vector<2x8x8xf32> to vector<2x8xf32>
    %86 = vector.shape_cast %85 : vector<2x8xf32> to vector<2x8x1xf32>
    %87 = vector.broadcast %86 : vector<2x8x1xf32> to vector<2x8x8xf32>
    %88 = arith.subf %84, %87 : vector<2x8x8xf32>
    %89 = math.exp %88 : vector<2x8x8xf32>
    %cst_39 = arith.constant dense<0.000000e+00> : vector<2x8xf32>
    %90 = vector.multi_reduction <add>, %89, %cst_39 [2] : vector<2x8x8xf32> to vector<2x8xf32>
    %91 = vector.shape_cast %90 : vector<2x8xf32> to vector<2x8x1xf32>
    %92 = tpu.reciprocal %91 {approx = true} : vector<2x8x1xf32> -> vector<2x8x1xf32>
    %93 = vector.broadcast %92 : vector<2x8x1xf32> to vector<2x8x8xf32>
    %94 = arith.mulf %89, %93 : vector<2x8x8xf32>
    %95 = arith.truncf %94 : vector<2x8x8xf32> to vector<2x8x8xbf16>
    %cst_40 = arith.constant dense<0.000000e+00> : vector<2x8x16xf32>
    %96 = tpu.matmul %95, %81, %cst_40 {dimension_numbers = #tpu.dot_dimension_numbers<[2], [1], [1], [2], [0, 0, 0, 1, 1, 2], [0], [0]>} : vector<2x8x8xbf16>, vector<2x8x16xbf16>, vector<2x8x16xf32> -> vector<2x8x16xf32>
    %c64 = arith.constant 64 : index
    %c0_41 = arith.constant 0 : index
    %97 = vector.load %arg2[%c64, %c0_41] : memref<240x128xbf16, #tpu.memory_space<vmem>>, vector<16x32xbf16>
    %98 = arith.truncf %96 : vector<2x8x16xf32> to vector<2x8x16xbf16>
    %cst_42 = arith.constant dense<0.000000e+00> : vector<2x8x32xf32>
    %99 = tpu.matmul %98, %97, %cst_42 {dimension_numbers = #tpu.dot_dimension_numbers<[2], [0], [0, 1], [1], [0, 0, 0, 1, 1, 1], [], []>} : vector<2x8x16xbf16>, vector<16x32xbf16>, vector<2x8x32xf32> -> vector<2x8x32xf32>
    %100 = arith.addf %75, %99 : vector<2x8x32xf32>
    %101 = vector.shape_cast %100 : vector<2x8x32xf32> to vector<16x32xf32>
    %102 = vector.broadcast %10 : vector<1x32xf32> to vector<16x32xf32>
    %103 = arith.addf %101, %102 : vector<16x32xf32>
    %104 = arith.addf %46, %103 : vector<16x32xf32>
    %cst_43 = arith.constant dense<0.000000e+00> : vector<16xf32>
    %105 = vector.multi_reduction <add>, %104, %cst_43 [1] : vector<16x32xf32> to vector<16xf32>
    %106 = vector.shape_cast %105 : vector<16xf32> to vector<16x1xf32>
    %cst_44 = arith.constant 3.200000e+01 : f32
    %107 = vector.broadcast %cst_44 : f32 to vector<16x1xf32>
    %108 = arith.divf %106, %107 : vector<16x1xf32>
    %109 = vector.broadcast %108 : vector<16x1xf32> to vector<16x32xf32>
    %110 = arith.subf %104, %109 : vector<16x32xf32>
    %111 = arith.mulf %110, %110 : vector<16x32xf32>
    %cst_45 = arith.constant dense<0.000000e+00> : vector<16xf32>
    %112 = vector.multi_reduction <add>, %111, %cst_45 [1] : vector<16x32xf32> to vector<16xf32>
    %113 = vector.shape_cast %112 : vector<16xf32> to vector<16x1xf32>
    %cst_46 = arith.constant 3.200000e+01 : f32
    %114 = vector.broadcast %cst_46 : f32 to vector<16x1xf32>
    %115 = arith.divf %113, %114 : vector<16x1xf32>
    %116 = vector.broadcast %108 : vector<16x1xf32> to vector<16x32xf32>
    %117 = arith.subf %104, %116 : vector<16x32xf32>
    %cst_47 = arith.constant 9.99999996E-13 : f32
    %118 = vector.broadcast %cst_47 : f32 to vector<16x1xf32>
    %119 = arith.addf %115, %118 : vector<16x1xf32>
    %120 = math.rsqrt %119 : vector<16x1xf32>
    %121 = vector.broadcast %120 : vector<16x1xf32> to vector<16x32xf32>
    %122 = arith.mulf %117, %121 : vector<16x32xf32>
    %123 = vector.broadcast %11 : vector<1x32xf32> to vector<16x32xf32>
    %124 = arith.mulf %122, %123 : vector<16x32xf32>
    %125 = vector.broadcast %12 : vector<1x32xf32> to vector<16x32xf32>
    %126 = arith.addf %124, %125 : vector<16x32xf32>
    %127 = arith.truncf %126 : vector<16x32xf32> to vector<16x32xbf16>
    %cst_48 = arith.constant dense<0.000000e+00> : vector<16x64xf32>
    %128 = tpu.matmul %127, %2, %cst_48 {dimension_numbers = #tpu.dot_dimension_numbers<[1], [0], [0], [1], [0, 0, 1, 1], [], []>} : vector<16x32xbf16>, vector<32x64xbf16>, vector<16x64xf32> -> vector<16x64xf32>
    %129 = vector.broadcast %13 : vector<1x64xf32> to vector<16x64xf32>
    %130 = arith.addf %128, %129 : vector<16x64xf32>
    %131 = arith.mulf %130, %130 : vector<16x64xf32>
    %132 = arith.mulf %130, %131 : vector<16x64xf32>
    %cst_49 = arith.constant 4.471500e-02 : f32
    %133 = vector.broadcast %cst_49 : f32 to vector<16x64xf32>
    %134 = arith.mulf %133, %132 : vector<16x64xf32>
    %135 = arith.addf %130, %134 : vector<16x64xf32>
    %cst_50 = arith.constant 0.797884583 : f32
    %136 = vector.broadcast %cst_50 : f32 to vector<16x64xf32>
    %137 = arith.mulf %136, %135 : vector<16x64xf32>
    %138 = math.tanh %137 : vector<16x64xf32>
    %cst_51 = arith.constant 1.000000e+00 : f32
    %139 = vector.broadcast %cst_51 : f32 to vector<16x64xf32>
    %140 = arith.addf %139, %138 : vector<16x64xf32>
    %cst_52 = arith.constant 5.000000e-01 : f32
    %141 = vector.broadcast %cst_52 : f32 to vector<16x64xf32>
    %142 = arith.mulf %141, %140 : vector<16x64xf32>
    %143 = arith.mulf %130, %142 : vector<16x64xf32>
    %144 = arith.truncf %143 : vector<16x64xf32> to vector<16x64xbf16>
    %cst_53 = arith.constant dense<0.000000e+00> : vector<16x32xf32>
    %145 = tpu.matmul %144, %3, %cst_53 {dimension_numbers = #tpu.dot_dimension_numbers<[1], [0], [0], [1], [0, 0, 1, 1], [], []>} : vector<16x64xbf16>, vector<64x32xbf16>, vector<16x32xf32> -> vector<16x32xf32>
    %146 = vector.broadcast %14 : vector<1x32xf32> to vector<16x32xf32>
    %147 = arith.addf %145, %146 : vector<16x32xf32>
    %148 = arith.addf %126, %147 : vector<16x32xf32>
    %cst_54 = arith.constant dense<0.000000e+00> : vector<16xf32>
    %149 = vector.multi_reduction <add>, %148, %cst_54 [1] : vector<16x32xf32> to vector<16xf32>
    %150 = vector.shape_cast %149 : vector<16xf32> to vector<16x1xf32>
    %cst_55 = arith.constant 3.200000e+01 : f32
    %151 = vector.broadcast %cst_55 : f32 to vector<16x1xf32>
    %152 = arith.divf %150, %151 : vector<16x1xf32>
    %153 = vector.broadcast %152 : vector<16x1xf32> to vector<16x32xf32>
    %154 = arith.subf %148, %153 : vector<16x32xf32>
    %155 = arith.mulf %154, %154 : vector<16x32xf32>
    %cst_56 = arith.constant dense<0.000000e+00> : vector<16xf32>
    %156 = vector.multi_reduction <add>, %155, %cst_56 [1] : vector<16x32xf32> to vector<16xf32>
    %157 = vector.shape_cast %156 : vector<16xf32> to vector<16x1xf32>
    %cst_57 = arith.constant 3.200000e+01 : f32
    %158 = vector.broadcast %cst_57 : f32 to vector<16x1xf32>
    %159 = arith.divf %157, %158 : vector<16x1xf32>
    %160 = vector.broadcast %152 : vector<16x1xf32> to vector<16x32xf32>
    %161 = arith.subf %148, %160 : vector<16x32xf32>
    %cst_58 = arith.constant 9.99999996E-13 : f32
    %162 = vector.broadcast %cst_58 : f32 to vector<16x1xf32>
    %163 = arith.addf %159, %162 : vector<16x1xf32>
    %164 = math.rsqrt %163 : vector<16x1xf32>
    %165 = vector.broadcast %164 : vector<16x1xf32> to vector<16x32xf32>
    %166 = arith.mulf %161, %165 : vector<16x32xf32>
    %167 = vector.broadcast %15 : vector<1x32xf32> to vector<16x32xf32>
    %168 = arith.mulf %166, %167 : vector<16x32xf32>
    %169 = vector.broadcast %16 : vector<1x32xf32> to vector<16x32xf32>
    %170 = arith.addf %168, %169 : vector<16x32xf32>
    %171 = arith.truncf %170 : vector<16x32xf32> to vector<16x32xbf16>
    %cst_59 = arith.constant dense<0.000000e+00> : vector<16x96xf32>
    %172 = tpu.matmul %171, %1, %cst_59 {dimension_numbers = #tpu.dot_dimension_numbers<[1], [0], [0], [1], [0, 0, 1, 1], [], []>} : vector<16x32xbf16>, vector<32x96xbf16>, vector<16x96xf32> -> vector<16x96xf32>
    %173 = vector.broadcast %9 : vector<1x96xf32> to vector<16x96xf32>
    %174 = arith.addf %172, %173 : vector<16x96xf32>
    %175 = vector.shape_cast %174 : vector<16x96xf32> to vector<2x8x96xf32>
    %176 = vector.extract_strided_slice %175 {offsets = [0, 0, 0], sizes = [2, 8, 16], strides = [1, 1, 1]} : vector<2x8x96xf32> to vector<2x8x16xf32>
    %177 = arith.truncf %176 : vector<2x8x16xf32> to vector<2x8x16xbf16>
    %178 = vector.extract_strided_slice %175 {offsets = [0, 0, 32], sizes = [2, 8, 16], strides = [1, 1, 1]} : vector<2x8x96xf32> to vector<2x8x16xf32>
    %179 = arith.truncf %178 : vector<2x8x16xf32> to vector<2x8x16xbf16>
    %180 = vector.extract_strided_slice %175 {offsets = [0, 0, 64], sizes = [2, 8, 16], strides = [1, 1, 1]} : vector<2x8x96xf32> to vector<2x8x16xf32>
    %181 = arith.truncf %180 : vector<2x8x16xf32> to vector<2x8x16xbf16>
    %cst_60 = arith.constant dense<0.000000e+00> : vector<2x8x8xf32>
    %182 = tpu.matmul %177, %179, %cst_60 {dimension_numbers = #tpu.dot_dimension_numbers<[2], [2], [1], [1], [0, 0, 0, 1, 1, 1], [0], [0]>} : vector<2x8x16xbf16>, vector<2x8x16xbf16>, vector<2x8x8xf32> -> vector<2x8x8xf32>
    %183 = vector.broadcast %19 : vector<2x1x8xf32> to vector<2x8x8xf32>
    %184 = arith.addf %182, %183 : vector<2x8x8xf32>
    %cst_61 = arith.constant dense<0xFF800000> : vector<2x8xf32>
    %185 = vector.multi_reduction <maximumf>, %184, %cst_61 [2] : vector<2x8x8xf32> to vector<2x8xf32>
    %186 = vector.shape_cast %185 : vector<2x8xf32> to vector<2x8x1xf32>
    %187 = vector.broadcast %186 : vector<2x8x1xf32> to vector<2x8x8xf32>
    %188 = arith.subf %184, %187 : vector<2x8x8xf32>
    %189 = math.exp %188 : vector<2x8x8xf32>
    %cst_62 = arith.constant dense<0.000000e+00> : vector<2x8xf32>
    %190 = vector.multi_reduction <add>, %189, %cst_62 [2] : vector<2x8x8xf32> to vector<2x8xf32>
    %191 = vector.shape_cast %190 : vector<2x8xf32> to vector<2x8x1xf32>
    %192 = tpu.reciprocal %191 {approx = true} : vector<2x8x1xf32> -> vector<2x8x1xf32>
    %193 = vector.broadcast %192 : vector<2x8x1xf32> to vector<2x8x8xf32>
    %194 = arith.mulf %189, %193 : vector<2x8x8xf32>
    %195 = arith.truncf %194 : vector<2x8x8xf32> to vector<2x8x8xbf16>
    %cst_63 = arith.constant dense<0.000000e+00> : vector<2x8x16xf32>
    %196 = tpu.matmul %195, %181, %cst_63 {dimension_numbers = #tpu.dot_dimension_numbers<[2], [1], [1], [2], [0, 0, 0, 1, 1, 2], [0], [0]>} : vector<2x8x8xbf16>, vector<2x8x16xbf16>, vector<2x8x16xf32> -> vector<2x8x16xf32>
    %c48_64 = arith.constant 48 : index
    %c0_65 = arith.constant 0 : index
    %197 = vector.load %arg2[%c48_64, %c0_65] : memref<240x128xbf16, #tpu.memory_space<vmem>>, vector<16x32xbf16>
    %198 = arith.truncf %196 : vector<2x8x16xf32> to vector<2x8x16xbf16>
    %cst_66 = arith.constant dense<0.000000e+00> : vector<2x8x32xf32>
    %199 = tpu.matmul %198, %197, %cst_66 {dimension_numbers = #tpu.dot_dimension_numbers<[2], [0], [0, 1], [1], [0, 0, 0, 1, 1, 1], [], []>} : vector<2x8x16xbf16>, vector<16x32xbf16>, vector<2x8x32xf32> -> vector<2x8x32xf32>
    %200 = vector.extract_strided_slice %175 {offsets = [0, 0, 16], sizes = [2, 8, 16], strides = [1, 1, 1]} : vector<2x8x96xf32> to vector<2x8x16xf32>
    %201 = arith.truncf %200 : vector<2x8x16xf32> to vector<2x8x16xbf16>
    %202 = vector.extract_strided_slice %175 {offsets = [0, 0, 48], sizes = [2, 8, 16], strides = [1, 1, 1]} : vector<2x8x96xf32> to vector<2x8x16xf32>
    %203 = arith.truncf %202 : vector<2x8x16xf32> to vector<2x8x16xbf16>
    %204 = vector.extract_strided_slice %175 {offsets = [0, 0, 80], sizes = [2, 8, 16], strides = [1, 1, 1]} : vector<2x8x96xf32> to vector<2x8x16xf32>
    %205 = arith.truncf %204 : vector<2x8x16xf32> to vector<2x8x16xbf16>
    %cst_67 = arith.constant dense<0.000000e+00> : vector<2x8x8xf32>
    %206 = tpu.matmul %201, %203, %cst_67 {dimension_numbers = #tpu.dot_dimension_numbers<[2], [2], [1], [1], [0, 0, 0, 1, 1, 1], [0], [0]>} : vector<2x8x16xbf16>, vector<2x8x16xbf16>, vector<2x8x8xf32> -> vector<2x8x8xf32>
    %207 = vector.broadcast %19 : vector<2x1x8xf32> to vector<2x8x8xf32>
    %208 = arith.addf %206, %207 : vector<2x8x8xf32>
    %cst_68 = arith.constant dense<0xFF800000> : vector<2x8xf32>
    %209 = vector.multi_reduction <maximumf>, %208, %cst_68 [2] : vector<2x8x8xf32> to vector<2x8xf32>
    %210 = vector.shape_cast %209 : vector<2x8xf32> to vector<2x8x1xf32>
    %211 = vector.broadcast %210 : vector<2x8x1xf32> to vector<2x8x8xf32>
    %212 = arith.subf %208, %211 : vector<2x8x8xf32>
    %213 = math.exp %212 : vector<2x8x8xf32>
    %cst_69 = arith.constant dense<0.000000e+00> : vector<2x8xf32>
    %214 = vector.multi_reduction <add>, %213, %cst_69 [2] : vector<2x8x8xf32> to vector<2x8xf32>
    %215 = vector.shape_cast %214 : vector<2x8xf32> to vector<2x8x1xf32>
    %216 = tpu.reciprocal %215 {approx = true} : vector<2x8x1xf32> -> vector<2x8x1xf32>
    %217 = vector.broadcast %216 : vector<2x8x1xf32> to vector<2x8x8xf32>
    %218 = arith.mulf %213, %217 : vector<2x8x8xf32>
    %219 = arith.truncf %218 : vector<2x8x8xf32> to vector<2x8x8xbf16>
    %cst_70 = arith.constant dense<0.000000e+00> : vector<2x8x16xf32>
    %220 = tpu.matmul %219, %205, %cst_70 {dimension_numbers = #tpu.dot_dimension_numbers<[2], [1], [1], [2], [0, 0, 0, 1, 1, 2], [0], [0]>} : vector<2x8x8xbf16>, vector<2x8x16xbf16>, vector<2x8x16xf32> -> vector<2x8x16xf32>
    %c64_71 = arith.constant 64 : index
    %c0_72 = arith.constant 0 : index
    %221 = vector.load %arg2[%c64_71, %c0_72] : memref<240x128xbf16, #tpu.memory_space<vmem>>, vector<16x32xbf16>
    %222 = arith.truncf %220 : vector<2x8x16xf32> to vector<2x8x16xbf16>
    %cst_73 = arith.constant dense<0.000000e+00> : vector<2x8x32xf32>
    %223 = tpu.matmul %222, %221, %cst_73 {dimension_numbers = #tpu.dot_dimension_numbers<[2], [0], [0, 1], [1], [0, 0, 0, 1, 1, 1], [], []>} : vector<2x8x16xbf16>, vector<16x32xbf16>, vector<2x8x32xf32> -> vector<2x8x32xf32>
    %224 = arith.addf %199, %223 : vector<2x8x32xf32>
    %225 = vector.shape_cast %224 : vector<2x8x32xf32> to vector<16x32xf32>
    %226 = vector.broadcast %10 : vector<1x32xf32> to vector<16x32xf32>
    %227 = arith.addf %225, %226 : vector<16x32xf32>
    %228 = arith.addf %170, %227 : vector<16x32xf32>
    %cst_74 = arith.constant dense<0.000000e+00> : vector<16xf32>
    %229 = vector.multi_reduction <add>, %228, %cst_74 [1] : vector<16x32xf32> to vector<16xf32>
    %230 = vector.shape_cast %229 : vector<16xf32> to vector<16x1xf32>
    %cst_75 = arith.constant 3.200000e+01 : f32
    %231 = vector.broadcast %cst_75 : f32 to vector<16x1xf32>
    %232 = arith.divf %230, %231 : vector<16x1xf32>
    %233 = vector.broadcast %232 : vector<16x1xf32> to vector<16x32xf32>
    %234 = arith.subf %228, %233 : vector<16x32xf32>
    %235 = arith.mulf %234, %234 : vector<16x32xf32>
    %cst_76 = arith.constant dense<0.000000e+00> : vector<16xf32>
    %236 = vector.multi_reduction <add>, %235, %cst_76 [1] : vector<16x32xf32> to vector<16xf32>
    %237 = vector.shape_cast %236 : vector<16xf32> to vector<16x1xf32>
    %cst_77 = arith.constant 3.200000e+01 : f32
    %238 = vector.broadcast %cst_77 : f32 to vector<16x1xf32>
    %239 = arith.divf %237, %238 : vector<16x1xf32>
    %240 = vector.broadcast %232 : vector<16x1xf32> to vector<16x32xf32>
    %241 = arith.subf %228, %240 : vector<16x32xf32>
    %cst_78 = arith.constant 9.99999996E-13 : f32
    %242 = vector.broadcast %cst_78 : f32 to vector<16x1xf32>
    %243 = arith.addf %239, %242 : vector<16x1xf32>
    %244 = math.rsqrt %243 : vector<16x1xf32>
    %245 = vector.broadcast %244 : vector<16x1xf32> to vector<16x32xf32>
    %246 = arith.mulf %241, %245 : vector<16x32xf32>
    %247 = vector.broadcast %11 : vector<1x32xf32> to vector<16x32xf32>
    %248 = arith.mulf %246, %247 : vector<16x32xf32>
    %249 = vector.broadcast %12 : vector<1x32xf32> to vector<16x32xf32>
    %250 = arith.addf %248, %249 : vector<16x32xf32>
    %251 = arith.truncf %250 : vector<16x32xf32> to vector<16x32xbf16>
    %cst_79 = arith.constant dense<0.000000e+00> : vector<16x64xf32>
    %252 = tpu.matmul %251, %2, %cst_79 {dimension_numbers = #tpu.dot_dimension_numbers<[1], [0], [0], [1], [0, 0, 1, 1], [], []>} : vector<16x32xbf16>, vector<32x64xbf16>, vector<16x64xf32> -> vector<16x64xf32>
    %253 = vector.broadcast %13 : vector<1x64xf32> to vector<16x64xf32>
    %254 = arith.addf %252, %253 : vector<16x64xf32>
    %255 = arith.mulf %254, %254 : vector<16x64xf32>
    %256 = arith.mulf %254, %255 : vector<16x64xf32>
    %cst_80 = arith.constant 4.471500e-02 : f32
    %257 = vector.broadcast %cst_80 : f32 to vector<16x64xf32>
    %258 = arith.mulf %257, %256 : vector<16x64xf32>
    %259 = arith.addf %254, %258 : vector<16x64xf32>
    %cst_81 = arith.constant 0.797884583 : f32
    %260 = vector.broadcast %cst_81 : f32 to vector<16x64xf32>
    %261 = arith.mulf %260, %259 : vector<16x64xf32>
    %262 = math.tanh %261 : vector<16x64xf32>
    %cst_82 = arith.constant 1.000000e+00 : f32
    %263 = vector.broadcast %cst_82 : f32 to vector<16x64xf32>
    %264 = arith.addf %263, %262 : vector<16x64xf32>
    %cst_83 = arith.constant 5.000000e-01 : f32
    %265 = vector.broadcast %cst_83 : f32 to vector<16x64xf32>
    %266 = arith.mulf %265, %264 : vector<16x64xf32>
    %267 = arith.mulf %254, %266 : vector<16x64xf32>
    %268 = arith.truncf %267 : vector<16x64xf32> to vector<16x64xbf16>
    %cst_84 = arith.constant dense<0.000000e+00> : vector<16x32xf32>
    %269 = tpu.matmul %268, %3, %cst_84 {dimension_numbers = #tpu.dot_dimension_numbers<[1], [0], [0], [1], [0, 0, 1, 1], [], []>} : vector<16x64xbf16>, vector<64x32xbf16>, vector<16x32xf32> -> vector<16x32xf32>
    %270 = vector.broadcast %14 : vector<1x32xf32> to vector<16x32xf32>
    %271 = arith.addf %269, %270 : vector<16x32xf32>
    %272 = arith.addf %250, %271 : vector<16x32xf32>
    %cst_85 = arith.constant dense<0.000000e+00> : vector<16xf32>
    %273 = vector.multi_reduction <add>, %272, %cst_85 [1] : vector<16x32xf32> to vector<16xf32>
    %274 = vector.shape_cast %273 : vector<16xf32> to vector<16x1xf32>
    %cst_86 = arith.constant 3.200000e+01 : f32
    %275 = vector.broadcast %cst_86 : f32 to vector<16x1xf32>
    %276 = arith.divf %274, %275 : vector<16x1xf32>
    %277 = vector.broadcast %276 : vector<16x1xf32> to vector<16x32xf32>
    %278 = arith.subf %272, %277 : vector<16x32xf32>
    %279 = arith.mulf %278, %278 : vector<16x32xf32>
    %cst_87 = arith.constant dense<0.000000e+00> : vector<16xf32>
    %280 = vector.multi_reduction <add>, %279, %cst_87 [1] : vector<16x32xf32> to vector<16xf32>
    %281 = vector.shape_cast %280 : vector<16xf32> to vector<16x1xf32>
    %cst_88 = arith.constant 3.200000e+01 : f32
    %282 = vector.broadcast %cst_88 : f32 to vector<16x1xf32>
    %283 = arith.divf %281, %282 : vector<16x1xf32>
    %284 = vector.broadcast %276 : vector<16x1xf32> to vector<16x32xf32>
    %285 = arith.subf %272, %284 : vector<16x32xf32>
    %cst_89 = arith.constant 9.99999996E-13 : f32
    %286 = vector.broadcast %cst_89 : f32 to vector<16x1xf32>
    %287 = arith.addf %283, %286 : vector<16x1xf32>
    %288 = math.rsqrt %287 : vector<16x1xf32>
    %289 = vector.broadcast %288 : vector<16x1xf32> to vector<16x32xf32>
    %290 = arith.mulf %285, %289 : vector<16x32xf32>
    %291 = vector.broadcast %15 : vector<1x32xf32> to vector<16x32xf32>
    %292 = arith.mulf %290, %291 : vector<16x32xf32>
    %293 = vector.broadcast %16 : vector<1x32xf32> to vector<16x32xf32>
    %294 = arith.addf %292, %293 : vector<16x32xf32>
    %295 = vector.shape_cast %294 : vector<16x32xf32> to vector<2x8x32xf32>
    %296 = vector.extract_strided_slice %295 {offsets = [0, 0, 0], sizes = [2, 1, 32], strides = [1, 1, 1]} : vector<2x8x32xf32> to vector<2x1x32xf32>
    %297 = vector.shape_cast %296 : vector<2x1x32xf32> to vector<2x32xf32>
    %298 = arith.truncf %297 : vector<2x32xf32> to vector<2x32xbf16>
    %cst_90 = arith.constant dense<0.000000e+00> : vector<2x32xf32>
    %299 = tpu.matmul %298, %4, %cst_90 {dimension_numbers = #tpu.dot_dimension_numbers<[1], [0], [0], [1], [0, 0, 1, 1], [], []>} : vector<2x32xbf16>, vector<32x32xbf16>, vector<2x32xf32> -> vector<2x32xf32>
    %300 = vector.broadcast %17 : vector<1x32xf32> to vector<2x32xf32>
    %301 = arith.addf %299, %300 : vector<2x32xf32>
    %302 = math.tanh %301 : vector<2x32xf32>
    %303 = arith.truncf %302 : vector<2x32xf32> to vector<2x32xbf16>
    %cst_91 = arith.constant dense<0.000000e+00> : vector<2x128xf32>
    %304 = tpu.matmul %303, %5, %cst_91 {dimension_numbers = #tpu.dot_dimension_numbers<[1], [0], [0], [1], [0, 0, 1, 1], [], []>} : vector<2x32xbf16>, vector<32x128xbf16>, vector<2x128xf32> -> vector<2x128xf32>
    %305 = vector.broadcast %18 : vector<1x128xf32> to vector<2x128xf32>
    %306 = arith.addf %304, %305 : vector<2x128xf32>
    %c0_92 = arith.constant 0 : index
    %c0_93 = arith.constant 0 : index
    %307 = vector.load %arg4[%c0_92, %c0_93] : memref<2x128xf32, #tpu.memory_space<vmem>>, vector<2x128xf32>
    tpu.vector_store %arg4[%c0_92, %c0_93], %306 {strides = array<i32>} : memref<2x128xf32, #tpu.memory_space<vmem>>, vector<2x128xf32>,
    return
  }
}

</mosaic_0001>

<bundles_post_ra>
// kernel: tpu_custom_call.1
= control target key start
LH: loop header
LB: loop body
LE: loop exit
PB: predicated region body
PF: predicated region fallthrough
CT: control target
= control target key end

     0   :  { %9 = vsyncpa [#allocation3], 0  ;;  %s1932_s0 = inlined_call_operand.hbm [shape: f32[16,16], index: 0, kind: input, shape index: {}]   ;;  %s1933_s1 = inlined_call_operand.hbm [shape: f32[2,1,8], index: 1, kind: input, shape index: {}]   ;;  %s1934_s2 = inlined_call_operand.hbm [shape: bf16[240,128], index: 2, kind: input, shape index: {}]   ;;  %s1935_s3 = inlined_call_operand.hbm [shape: f32[16,128], index: 3, kind: input, shape index: {}]   ;;  %s1936_s4 = inlined_call_operand.hbm [shape: f32[2,128], index: 4, kind: output, shape index: {}]  }
   0x1   :  { %10 = vsyncpa [#allocation6], 0 }
   0x2   :  { %11 = vsyncpa [#allocation9], 0  ;;  %s30_s17 = sshll.u32 %s1933_s1, 4  ;;  %s31_s17 = int_to_ptr.hbm [resolvable:$true] %s30_s17 }
   0x3   :  { %12 = vsyncpa [#allocation4], 0  ;;  %s1617_s18 = smov [#allocation5]   ;;  %s17_s22 = sshll.u32 %s1932_s0, 4  ;;  %s18_s22 = int_to_ptr.hbm [resolvable:$true] %s17_s22 }
   0x4   :  { %s32_s19 = sshll.u32 %s1617_s18, 4  ;;  %s1618_s23 = smov 16   ;;  %s33_s19 = int_to_ptr.vmem [resolvable:$true] %s32_s19 }
   0x5   :  { %s1619_s24 = smov 1   ;;  %s1620_s25 = smov [#allocation2]  }
   0x6   :  { %38 = dma.hbm_to_vmem [thread:$0]  %s31_s17, 32, %s33_s19, [#allocation6], %s1618_s23, %s1618_s23, %s1619_s24  }
   0x7   :  { %s19_s26 = sshll.u32 %s1620_s25, 4  ;;  %s1621_s27 = smov 128   ;;  %s20_s26 = int_to_ptr.vmem [resolvable:$true] %s19_s26 }
   0x8   :  { %s1622_s28 = smov 8   ;;  %s43_s30 = sshll.u32 %s1934_s2, 4  ;;  %s44_s30 = int_to_ptr.hbm [resolvable:$true] %s43_s30 }
   0x9   :  { %25 = dma.hbm_to_vmem [thread:$0]  %s18_s22, 256, %s20_s26, [#allocation3], %s1621_s27, %s1621_s27, %s1622_s28  }
   0xa   :  { %s1623_s5 = smov [#allocation7]   ;;  %s56_s8 = sshll.u32 %s1935_s3, 4  ;;  %s57_s8 = int_to_ptr.hbm [resolvable:$true] %s56_s8 }
   0xb   :  { %s45_s6 = sshll.u32 %s1623_s5, 4  ;;  %s1624_s9 = smov 64   ;;  %s46_s6 = int_to_ptr.vmem [resolvable:$true] %s45_s6 }
   0xc   :  { %s1625_s10 = smov 4   ;;  %s1626_s11 = smov [#allocation8]  }
   0xd   :  { %51 = dma.hbm_to_vmem [thread:$0]  %s44_s30, 1920, %s46_s6, [#allocation6], %s1624_s9, %s1624_s9, %s1625_s10  }
   0xe   :  { %s58_s12 = sshll.u32 %s1626_s11, 4  ;;  %s59_s12 = int_to_ptr.vmem [resolvable:$true] %s58_s12 }
   0xf   :  { %64 = dma.hbm_to_vmem [thread:$0]  %s57_s8, 256, %s59_s12, [#allocation9], %s1621_s27, %s1621_s27, %s1622_s28  }
  0x10   :  { %1609 = dma.done.wait [#allocation3], 256  }
  0x11   :  { %1610 = vsyncadd [#allocation3], 4294967040 }
  0x12   :  { %1611 = dma.done.wait [#allocation6], 1952  }
  0x13   :  { %1612 = vsyncadd [#allocation6], 4294965344 }
  0x14   :  { %1613 = dma.done.wait [#allocation9], 256  }
  0x15   :  { %1614 = vsyncadd [#allocation9], 4294967040  ;;  %vm125_vm0 = vcmask 130048   ;;  %v123_v0 = vld [vmem:[#allocation2] sm:$0xff]  ;;  %v124_v2 = vld [vmem:[#allocation2 + $0x8] sm:$0xff]  ;;  %v1627_v4 = vmov 16.0  }
  0x16   :  { %v126_v1 = vsel %vm125_vm0, %v123_v0, 0.0  ;;  %v129_v3 = vsel %vm125_vm0, %v124_v2, 0.0  ;;  %1423 = vrcp.f32 %v1627_v4  ;;  %v1376_v21 = vld [vmem:[#allocation7] sm:$0xff]  ;;  %v1408_v41 = vld [vmem:[#allocation8] ss:$0 sm:$0xff]  ;;  %v1678_v51 = vld [vmem:[#allocation7 + $0x10] sm:$0xff] }
  0x17   :  { %127 = vadd.xlane.f32.xlu0 %v126_v1  ;;  %201 = vmatpush.bf16.msra.mxu0 %v1376_v21  ;;  %v1409_v46 = vld [vmem:[#allocation8 + $0x1] ss:$0 sm:$0xff]  ;;  %v1681_v52 = vld [vmem:[#allocation7 + $0x8] sm:$0xff]  ;;  %v1410_v54 = vld [vmem:[#allocation8 + $0x2] ss:$0 sm:$0xff]  ;;  %vm222_vm8 = vcmask 261120  }
  0x18   :  { %232 = vmatpush.bf16.msra.mxu1 %v1678_v51  ;;  %v1691_v59 = vld [vmem:[#allocation8 + $0x3] ss:$0 sm:$0xff]  ;;  %s1628_s2 = smov 80   ;;  %s1629_s3 = smov 96   ;;  %vm296_vm9 = vcmask 64512   ;;  %vm326_vm10 = vcmask 1043456  }
  0x19   :  { %s1630_s13 = smov 112   ;;  %s1631_s14 = smov 48  }
  0x1a   :  { %s1633_s15 = smov [#allocation10]   ;;  %s1275_s19 = sshll.u32 %s1936_s4, 4  ;;  %s1276_s19 = int_to_ptr.hbm [resolvable:$true] %s1275_s19 }
  0x1b   :  { %s1273_s16 = sshll.u32 %s1633_s15, 4  ;;  %s1274_s16 = int_to_ptr.vmem [resolvable:$true] %s1273_s16 }
  0x1c   :  { %v1424_v5 = vpop.eup %1423  ;;  %233 = vmatpush.bf16.msra.mxu1 %v1681_v52 }
  0x1d   :  { %v133_v6 = vmul.f32 16.0, %v1424_v5  ;;  %vm137_vm1 = vweird.f32 %v1424_v5 }
  0x1f   :  { %130 = vadd.xlane.f32.xlu0 %v129_v3  ;;  %v134_v7 = vsub.f32 1.0, %v133_v6 }
  0x21   :  { %v135_v8 = vmul.f32 %v1424_v5, %v134_v7 }
  0x23   :  { %v136_v9 = vadd.f32 %v1424_v5, %v135_v8 }
  0x25   :  { %v138_v10 = vsel %vm137_vm1, %v1424_v5, %v136_v9 }
  0x8a   :  { %v128_v11 = vpop.xlane.xlu0 %127 }
  0x8b   :  { %v139_v12 = vmul.f32 %v138_v10, %v128_v11 }
  0x8d   :  { %v141_v13 = vsub.f32 %v123_v0, %v139_v12 }
  0x8f   :  { %v143_v14 = vmul.f32 %v141_v13, %v141_v13 }
  0x91   :  { %v145_v15 = vsel %vm125_vm0, %v143_v14, 0.0 }
  0x92   :  { %146 = vadd.xlane.f32.xlu1 %v145_v15  ;;  %v131_v16 = vpop.xlane.xlu0 %130 }
  0x93   :  { %v140_v17 = vmul.f32 %v138_v10, %v131_v16  ;;  %v1719_v16 = vld [vmem:[#allocation5] ss:$0 sm:$0xff] }
  0x95   :  { %v142_v18 = vsub.f32 %v124_v2, %v140_v17 }
  0x97   :  { %v144_v19 = vmul.f32 %v142_v18, %v142_v18 }
  0x99   :  { %v148_v20 = vsel %vm125_vm0, %v144_v19, 0.0 }
  0x9a   :  { %149 = vadd.xlane.f32.xlu1 %v148_v20  ;;  %v1723_v20 = vld [vmem:[#allocation5 + $0x1] ss:$0 sm:$0xff] }
 0x105   :  { %v147_v22 = vpop.xlane.xlu1 %146 }
 0x106   :  { %v151_v23 = vmul.f32 %v147_v22, %v138_v10 }
 0x108   :  { %v153_v24 = vadd.f32 1e-12, %v151_v23 }
 0x10a   :  { %1425 = vrsqrt.f32 %v153_v24  ;;  %vm161_vm3 = vweird.f32 %v153_v24 }
 0x10d   :  { %v150_v25 = vpop.xlane.xlu1 %149 }
 0x10e   :  { %v152_v26 = vmul.f32 %v150_v25, %v138_v10 }
 0x110   :  { %v1426_v27 = vpop.eup %1425  ;;  %v154_v28 = vadd.f32 1e-12, %v152_v26 }
 0x111   :  { %v156_v29 = vmul.f32 %v1426_v27, %v153_v24  ;;  %vm162_vm2 = vweird.f32 %v1426_v27 }
 0x112   :  { %1427 = vrsqrt.f32 %v154_v28  ;;  %vm163_vm4 = vmor %vm161_vm3, %vm162_vm2  ;;  %vm171_vm6 = vweird.f32 %v154_v28  ;;  %vm677_vm3 = vcmask 523264  }
 0x113   :  { %v157_v30 = vmul.f32 %v1426_v27, %v156_v29 }
 0x115   :  { %v158_v31 = vmul.f32 0.5, %v157_v30 }
 0x117   :  { %v159_v32 = vsub.f32 1.5, %v158_v31 }
 0x118   :  { %v1428_v33 = vpop.eup %1427 }
 0x119   :  { %v160_v34 = vmul.f32 %v1426_v27, %v159_v32  ;;  %v166_v35 = vmul.f32 %v1428_v33, %v154_v28  ;;  %vm172_vm5 = vweird.f32 %v1428_v33 }
 0x11a   :  { %vm173_vm7 = vmor %vm171_vm6, %vm172_vm5 }
 0x11b   :  { %v167_v36 = vmul.f32 %v1428_v33, %v166_v35  ;;  %v164_v37 = vsel %vm163_vm4, %v1426_v27, %v160_v34 }
 0x11c   :  { %v175_v40 = vmul.f32 %v164_v37, %v141_v13 }
 0x11d   :  { %v168_v38 = vmul.f32 0.5, %v167_v36 }
 0x11e   :  { %v178_v45 = vmul.f32 %v1408_v41, %v175_v40 }
 0x11f   :  { %v169_v39 = vsub.f32 1.5, %v168_v38 }
 0x120   :  { %v181_v48 = vadd.f32 %v1409_v46, %v178_v45 }
 0x121   :  { %v170_v42 = vmul.f32 %v1428_v33, %v169_v39 }
 0x123   :  { %v174_v43 = vsel %vm173_vm7, %v1428_v33, %v170_v42 }
 0x124   :  { %v176_v44 = vmul.f32 %v174_v43, %v142_v18 }
 0x126   :  { %v179_v47 = vmul.f32 %v1408_v41, %v176_v44 }
 0x128   :  { %v182_v49 = vadd.f32 %v1409_v46, %v179_v47 }
 0x12a   :  { %v183_v50 = vpack.c.bf16 %v182_v49, %v181_v48 }
 0x12c   :  { %1291 = vmatmul.msk.bf16.vlgmr.msra.gmra.mxu0 %vm125_vm0, %v183_v50 }
 0x1a9   :  { %v203_v53 = vpop.f32.mrf.mxu0 }
 0x1aa   :  { %v1684_v56 = vadd.f32 %v1410_v54, %v203_v53 }
 0x1b1   :  { %v205_v55 = vpop.f32.mrf.mxu0 }
 0x1b2   :  { %v1686_v57 = vadd.f32 %v1410_v54, %v205_v55 }
 0x1b4   :  { %v208_v58 = vpack.c.bf16 %v1686_v57, %v1684_v56 }
 0x1b6   :  { %1300 = vmatmul.msk.bf16.vlgmr.msra.gmra.mxu1 %vm222_vm8, %v208_v58 }
 0x233   :  { %v235_v60 = vpop.f32.mrf.mxu1 }
 0x234   :  { %v236_v61 = vadd.f32 %v1691_v59, %v235_v60 }
 0x236   :  { %v240_v62 = vpack.c.bf16 %v236_v61, %v236_v61 }
 0x238   :  { %v249_v63 = vunpack.c.l.b16 %v240_v62 }
 0x23a   :  { %v1694_v0 = vpack.c.b16 %v249_v63, %v249_v63 }
 0x23b   :  { %v237_v1 = vpop.f32.mrf.mxu1 }
 0x23c   :  { %v238_v2 = vadd.f32 %v1691_v59, %v237_v1  ;;  %370 = vrot.lane.b32.xlu0 %v1694_v0, %s1628_s2  ;;  %251 = vrot.lane.b32.xlu2 %v1694_v0, %s1629_s3 }
 0x23e   :  { %v241_v3 = vpack.c.bf16 %v238_v2, %v238_v2 }
 0x240   :  { %v273_v4 = vunpack.c.l.b16 %v241_v3 }
 0x242   :  { %v1701_v5 = vpack.c.b16 %v273_v4, %v273_v4 }
 0x244   :  { %393 = vrot.lane.b32.xlu1 %v1701_v5, %s1628_s2  ;;  %275 = vrot.lane.b32.xlu2 %v1701_v5, %s1629_s3 }
 0x24c   :  { %368 = vrot.lane.b32.xlu2 %v1694_v0, %s1630_s13 }
 0x254   :  { %391 = vrot.lane.b32.xlu2 %v1701_v5, %s1630_s13 }
 0x296   :  { %v252_v6 = vpop.permute.xlu2 %251 }
 0x297   :  { %v257_v7 = vsel %vm125_vm0, %v252_v6, 0 }
 0x298   :  { %266 = vmatpush.bf16.xpose.msra.mxu2 %v257_v7 }
 0x29e   :  { %v276_v8 = vpop.permute.xlu2 %275 }
 0x29f   :  { %1301 = vmatmul.msk.bf16.vlgmr.msra.gmra.mxu2 %vm125_vm0, %v240_v62  ;;  %v281_v9 = vsel %vm125_vm0, %v276_v8, 0 }
 0x2a0   :  { %290 = vmatpush.bf16.xpose.msra.mxu3 %v281_v9 }
 0x2a6   :  { %v369_v12 = vpop.permute.xlu2 %368 }
 0x2a7   :  { %1302 = vmatmul.msk.bf16.vlgmr.msra.gmra.mxu3 %vm125_vm0, %v241_v3 }
 0x2ae   :  { %v371_v10 = vpop.permute.xlu0 %370  ;;  %v392_v15 = vpop.permute.xlu2 %391 }
 0x2af   :  { %v376_v11 = vsel %vm125_vm0, %v371_v10, 0 }
 0x2b0   :  { %385 = vmatpush.bf16.xpose.msrb.mxu2 %v376_v11 }
 0x2b6   :  { %v394_v13 = vpop.permute.xlu1 %393 }
 0x2b7   :  { %1305 = vmatmul.msk.bf16.vlgmr.msrb.gmra.mxu2 %vm125_vm0, %v369_v12  ;;  %v399_v14 = vsel %vm125_vm0, %v394_v13, 0 }
 0x2b8   :  { %408 = vmatpush.bf16.xpose.msrb.mxu3 %v399_v14 }
 0x2bf   :  { %1306 = vmatmul.msk.bf16.vlgmr.msrb.gmra.mxu3 %vm125_vm0, %v392_v15 }
 0x322   :  { %v268_v17 = vpop.f32.mrf.mxu2 }
 0x323   :  { %v269_v18 = vadd.f32 %v1719_v16, %v268_v17 }
 0x325   :  { %v297_v19 = vsel %vm296_vm9, %v269_v18, -inf }
 0x326   :  { %298 = vmax.xlane.f32.xlu2 %v297_v19 }
 0x32a   :  { %v270_v21 = vpop.f32.mrf.mxu2  ;;  %v292_v22 = vpop.f32.mrf.mxu3 }
 0x32b   :  { %v293_v23 = vadd.f32 %v1723_v20, %v292_v22  ;;  %v1751_v21 = vld [vmem:[#allocation7 + $0x18] sm:$0xff] }
 0x32c   :  { %533 = vmatpush.bf16.msra.mxu3 %v1751_v21 }
 0x32d   :  { %v300_v24 = vsel %vm296_vm9, %v293_v23, -inf }
 0x32e   :  { %301 = vmax.xlane.f32.xlu0 %v300_v24 }
 0x332   :  { %v294_v25 = vpop.f32.mrf.mxu3 }
 0x33a   :  { %v387_v26 = vpop.f32.mrf.mxu2 }
 0x33b   :  { %v388_v27 = vadd.f32 %v1719_v16, %v387_v26 }
 0x33d   :  { %v414_v28 = vsel %vm296_vm9, %v388_v27, -inf }
 0x33e   :  { %415 = vmax.xlane.f32.xlu1 %v414_v28 }
 0x342   :  { %343 = vrot.lane.b32.xlu0 %v1701_v5, %s1624_s9  ;;  %v389_v29 = vpop.f32.mrf.mxu2  ;;  %v410_v30 = vpop.f32.mrf.mxu3 }
 0x343   :  { %v411_v31 = vadd.f32 %v1723_v20, %v410_v30 }
 0x345   :  { %v417_v32 = vsel %vm296_vm9, %v411_v31, -inf }
 0x346   :  { %418 = vmax.xlane.f32.xlu2 %v417_v32 }
 0x34a   :  { %v412_v33 = vpop.f32.mrf.mxu3 }
 0x357   :  { %321 = vrot.lane.b32.xlu1 %v1694_v0, %s1624_s9 }
 0x399   :  { %v299_v34 = vpop.xlane.xlu2 %298 }
 0x39a   :  { %v303_v35 = vsub.f32 %v269_v18, %v299_v34 }
 0x39c   :  { %v305_v36 = vmul.f32 1.442695, %v303_v35 }
 0x39e   :  { %1429 = vpow2.f32 %v305_v36 }
 0x3a1   :  { %v302_v37 = vpop.xlane.xlu0 %301 }
 0x3a2   :  { %v304_v38 = vsub.f32 %v293_v23, %v302_v37  ;;  %v1754_v23 = vld [vmem:[#allocation7 + $0x20] sm:$0xff] }
 0x3a3   :  { %505 = vmatpush.bf16.msra.mxu2 %v1754_v23 }
 0x3a4   :  { %v1430_v39 = vpop.eup %1429  ;;  %v307_v40 = vmul.f32 1.442695, %v304_v38 }
 0x3a5   :  { %v309_v41 = vsel %vm296_vm9, %v1430_v39, 0.0 }
 0x3a6   :  { %1431 = vpow2.f32 %v307_v40  ;;  %310 = vadd.xlane.f32.xlu0 %v309_v41  ;;  %v1761_v41 = vld [vmem:[#allocation8 + $0x4] ss:$0 sm:$0xff] }
 0x3a7   :  { %757 = vmatpush.bf16.msrb.mxu2 %v1678_v51 }
 0x3ab   :  { %758 = vmatpush.bf16.msrb.mxu2 %v1681_v52 }
 0x3ac   :  { %v1432_v42 = vpop.eup %1431 }
 0x3ad   :  { %v312_v43 = vsel %vm296_vm9, %v1432_v42, 0.0 }
 0x3ae   :  { %313 = vadd.xlane.f32.xlu2 %v312_v43 }
 0x3b1   :  { %v416_v44 = vpop.xlane.xlu1 %415 }
 0x3b2   :  { %v420_v45 = vsub.f32 %v388_v27, %v416_v44 }
 0x3b4   :  { %v422_v46 = vmul.f32 1.442695, %v420_v45  ;;  %v344_v47 = vpop.permute.xlu0 %343 }
 0x3b5   :  { %v349_v48 = vsel %vm326_vm10, %v344_v47, 0 }
 0x3b6   :  { %1433 = vpow2.f32 %v422_v46  ;;  %358 = vmatpush.bf16.msrb.mxu1 %v349_v48 }
 0x3b9   :  { %v419_v49 = vpop.xlane.xlu2 %418 }
 0x3ba   :  { %v421_v50 = vsub.f32 %v411_v31, %v419_v49  ;;  %459 = vrot.lane.b32.xlu0 %v1701_v5, %s1631_s14 }
 0x3bc   :  { %v1434_v53 = vpop.eup %1433  ;;  %v424_v54 = vmul.f32 1.442695, %v421_v50 }
 0x3bd   :  { %v426_v55 = vsel %vm296_vm9, %v1434_v53, 0.0 }
 0x3be   :  { %1435 = vpow2.f32 %v424_v54  ;;  %427 = vadd.xlane.f32.xlu2 %v426_v55  ;;  %v1632_v54 = vmov 32.0  }
 0x3c4   :  { %v1436_v58 = vpop.eup %1435 }
 0x3c5   :  { %v429_v60 = vsel %vm296_vm9, %v1436_v58, 0.0 }
 0x3c6   :  { %430 = vadd.xlane.f32.xlu2 %v429_v60 }
 0x3c9   :  { %v322_v61 = vpop.permute.xlu1 %321 }
 0x3ca   :  { %v328_v62 = vsel %vm326_vm10, %v322_v61, 0 }
 0x3cb   :  { %337 = vmatpush.bf16.msrb.mxu0 %v328_v62 }
 0x3de   :  { %438 = vrot.lane.b32.xlu2 %v1694_v0, %s1631_s14 }
 0x419   :  { %v311_v63 = vpop.xlane.xlu0 %310 }
 0x41a   :  { %1437 = vrcp.f32 %v311_v63 }
 0x420   :  { %v1438_v1 = vpop.eup %1437 }
 0x421   :  { %v317_v2 = vmul.f32 %v1438_v1, %v1430_v39  ;;  %v314_v3 = vpop.xlane.xlu2 %313 }
 0x422   :  { %1439 = vrcp.f32 %v314_v3 }
 0x423   :  { %v319_v4 = vpack.c.bf16 %v317_v2, %v317_v2 }
 0x425   :  { %1303 = vmatmul.msk.bf16.vlgmr.msrb.gmra.mxu0 %vm296_vm9, %v319_v4 }
 0x428   :  { %v1440_v5 = vpop.eup %1439 }
 0x429   :  { %v318_v6 = vmul.f32 %v1440_v5, %v1432_v42 }
 0x42b   :  { %v320_v7 = vpack.c.bf16 %v318_v6, %v318_v6 }
 0x42c   :  { %v460_v8 = vpop.permute.xlu0 %459 }
 0x42d   :  { %v465_v9 = vsel %vm326_vm10, %v460_v8, 0  ;;  %1304 = vmatmul.msk.bf16.vlgmr.msrb.gmra.mxu1 %vm296_vm9, %v320_v7 }
 0x42e   :  { %474 = vmatpush.bf16.msra.mxu1 %v465_v9  ;;  %v1775_v9 = vld [vmem:[#allocation7 + $0x30] sm:$0xff] }
 0x431   :  { %v428_v10 = vpop.xlane.xlu2 %427 }
 0x432   :  { %1441 = vrcp.f32 %v428_v10 }
 0x438   :  { %v1442_v11 = vpop.eup %1441 }
 0x439   :  { %v431_v0 = vpop.xlane.xlu2 %430  ;;  %v434_v13 = vmul.f32 %v1442_v11, %v1434_v53  ;;  %v1779_v11 = vld [vmem:[#allocation7 + $0x28] sm:$0xff] }
 0x43a   :  { %1443 = vrcp.f32 %v431_v0 }
 0x43b   :  { %v436_v19 = vpack.c.bf16 %v434_v13, %v434_v13  ;;  %1445 = vrcp.f32 %v1632_v54 }
 0x440   :  { %v1444_v12 = vpop.eup %1443 }
 0x441   :  { %v435_v14 = vmul.f32 %v1444_v12, %v1436_v58  ;;  %v439_v15 = vpop.permute.xlu2 %438  ;;  %v1446_v55 = vpop.eup %1445 }
 0x442   :  { %v444_v17 = vsel %vm326_vm10, %v439_v15, 0  ;;  %v552_v58 = vmul.f32 32.0, %v1446_v55  ;;  %vm556_vm11 = vweird.f32 %v1446_v55 }
 0x443   :  { %v437_v18 = vpack.c.bf16 %v435_v14, %v435_v14  ;;  %453 = vmatpush.bf16.msra.mxu0 %v444_v17 }
 0x444   :  { %v553_v60 = vsub.f32 1.0, %v552_v58 }
 0x445   :  { %1308 = vmatmul.msk.bf16.vlgmr.msra.gmra.mxu1 %vm296_vm9, %v437_v18 }
 0x446   :  { %1307 = vmatmul.msk.bf16.vlgmr.msra.gmra.mxu0 %vm296_vm9, %v436_v19  ;;  %v554_v61 = vmul.f32 %v1446_v55, %v553_v60 }
 0x447   :  { %625 = vmatpush.bf16.msrb.mxu0 %v1775_v9 }
 0x44b   :  { %626 = vmatpush.bf16.msrb.mxu0 %v1779_v11 }
 0x4a2   :  { %v339_v22 = vpop.f32.mrf.mxu0 }
 0x4a3   :  { %v366_v24 = vpack.c.bf16 %v339_v22, %v339_v22 }
 0x4a5   :  { %v514_v28 = vunpack.c.l.b16 %v366_v24 }
 0x4aa   :  { %v341_v25 = vpop.f32.mrf.mxu0  ;;  %v360_v26 = vpop.f32.mrf.mxu1 }
 0x4ab   :  { %v367_v27 = vpack.c.bf16 %v360_v26, %v360_v26 }
 0x4ad   :  { %v515_v29 = vunpack.c.l.b16 %v367_v27 }
 0x4af   :  { %v516_v30 = vpack.c.b16 %v515_v29, %v514_v28 }
 0x4b1   :  { %1318 = vmatmul.msk.bf16.vlgmr.msra.gmra.mxu3 %vm125_vm0, %v516_v30 }
 0x4b2   :  { %v362_v31 = vpop.f32.mrf.mxu1 }
 0x4c2   :  { %v476_v32 = vpop.f32.mrf.mxu1 }
 0x4c3   :  { %v483_v33 = vpack.c.bf16 %v476_v32, %v476_v32  ;;  %v455_v34 = vpop.f32.mrf.mxu0  ;;  %v1783_v32 = vld [vmem:[#allocation8 + $0x5] ss:$0 sm:$0xff] }
 0x4c4   :  { %v482_v35 = vpack.c.bf16 %v455_v34, %v455_v34 }
 0x4c5   :  { %v487_v36 = vunpack.c.l.b16 %v483_v33 }
 0x4c6   :  { %v486_v37 = vunpack.c.l.b16 %v482_v35 }
 0x4c8   :  { %v488_v38 = vpack.c.b16 %v487_v36, %v486_v37  ;;  %v1785_v36 = vld [vmem:[#allocation8 + $0x6] ss:$0 sm:$0xff] }
 0x4ca   :  { %v478_v51 = vpop.f32.mrf.mxu1  ;;  %1313 = vmatmul.msk.bf16.vlgmr.msra.gmra.mxu2 %vm125_vm0, %v488_v38 }
 0x4cb   :  { %v457_v39 = vpop.f32.mrf.mxu0 }
 0x534   :  { %v535_v40 = vpop.f32.mrf.mxu3 }
 0x53c   :  { %v537_v46 = vpop.f32.mrf.mxu3 }
 0x54d   :  { %v507_v52 = vpop.f32.mrf.mxu2 }
 0x54e   :  { %v536_v42 = vadd.f32 %v535_v40, %v507_v52 }
 0x550   :  { %v541_v43 = vadd.f32 %v1761_v41, %v536_v42  ;;  %v1792_v42 = vld [vmem:[#allocation7 + $0x50] sm:$0xff] }
 0x551   :  { %685 = vmatpush.bf16.msrb.mxu1 %v1792_v42 }
 0x552   :  { %v543_v44 = vadd.f32 %v541_v43, %v1684_v56  ;;  %v555_v56 = vadd.f32 %v1446_v55, %v554_v61  ;;  %v1795_v43 = vld [vmem:[#allocation7 + $0x48] sm:$0xff] }
 0x554   :  { %v545_v45 = vsel %vm222_vm8, %v543_v44, 0.0  ;;  %v1769_v62 = vsel %vm556_vm11, %v1446_v55, %v555_v56 }
 0x555   :  { %546 = vadd.xlane.f32.xlu1 %v545_v45  ;;  %v509_v47 = vpop.f32.mrf.mxu2  ;;  %686 = vmatpush.bf16.msrb.mxu1 %v1795_v43  ;;  %v1800_v45 = vld [vmem:[#allocation8 + $0x7] ss:$0 sm:$0xff] }
 0x556   :  { %v538_v48 = vadd.f32 %v537_v46, %v509_v47  ;;  %v1803_v46 = vld [vmem:[#allocation7 + $0x38] sm:$0xff] }
 0x558   :  { %v542_v49 = vadd.f32 %v1761_v41, %v538_v48 }
 0x55a   :  { %v544_v50 = vadd.f32 %v542_v49, %v1686_v57 }
 0x55c   :  { %v548_v53 = vsel %vm222_vm8, %v544_v50, 0.0 }
 0x55d   :  { %549 = vadd.xlane.f32.xlu0 %v548_v53 }
 0x5c8   :  { %v547_v63 = vpop.xlane.xlu1 %546 }
 0x5c9   :  { %v558_v1 = vmul.f32 %v1769_v62, %v547_v63 }
 0x5cb   :  { %v560_v2 = vsub.f32 %v543_v44, %v558_v1  ;;  %v1798_v44 = vld [vmem:[#allocation7 + $0x40] sm:$0xff] }
 0x5cc   :  { %687 = vmatpush.bf16.msrb.mxu1 %v1798_v44 }
 0x5cd   :  { %v562_v3 = vmul.f32 %v560_v2, %v560_v2 }
 0x5cf   :  { %v564_v57 = vsel %vm222_vm8, %v562_v3, 0.0 }
 0x5d0   :  { %565 = vadd.xlane.f32.xlu2 %v564_v57  ;;  %v550_v4 = vpop.xlane.xlu0 %549  ;;  %688 = vmatpush.bf16.msrb.mxu1 %v1803_v46 }
 0x5d1   :  { %v559_v5 = vmul.f32 %v1769_v62, %v550_v4 }
 0x5d3   :  { %v561_v6 = vsub.f32 %v544_v50, %v559_v5 }
 0x5d5   :  { %v563_v7 = vmul.f32 %v561_v6, %v561_v6 }
 0x5d7   :  { %v567_v8 = vsel %vm222_vm8, %v563_v7, 0.0 }
 0x5d8   :  { %568 = vadd.xlane.f32.xlu1 %v567_v8 }
 0x643   :  { %v566_v10 = vpop.xlane.xlu2 %565 }
 0x644   :  { %v570_v0 = vmul.f32 %v566_v10, %v1769_v62 }
 0x646   :  { %v572_v12 = vadd.f32 1e-12, %v570_v0 }
 0x648   :  { %1447 = vrsqrt.f32 %v572_v12  ;;  %vm580_vm13 = vweird.f32 %v572_v12 }
 0x64b   :  { %v569_v13 = vpop.xlane.xlu1 %568 }
 0x64c   :  { %v571_v14 = vmul.f32 %v569_v13, %v1769_v62 }
 0x64e   :  { %v1448_v15 = vpop.eup %1447  ;;  %v573_v17 = vadd.f32 1e-12, %v571_v14 }
 0x64f   :  { %v575_v18 = vmul.f32 %v1448_v15, %v572_v12  ;;  %vm581_vm12 = vweird.f32 %v1448_v15  ;;  %v1809_v12 = vld [vmem:[#allocation8 + $0x8] ss:$0 sm:$0xff] }
 0x650   :  { %1449 = vrsqrt.f32 %v573_v17  ;;  %vm582_vm14 = vmor %vm580_vm13, %vm581_vm12  ;;  %vm590_vm1 = vweird.f32 %v573_v17 }
 0x651   :  { %v576_v19 = vmul.f32 %v1448_v15, %v575_v18 }
 0x653   :  { %v577_v22 = vmul.f32 0.5, %v576_v19 }
 0x655   :  { %v578_v24 = vsub.f32 1.5, %v577_v22 }
 0x656   :  { %v1450_v25 = vpop.eup %1449 }
 0x657   :  { %v579_v26 = vmul.f32 %v1448_v15, %v578_v24  ;;  %v585_v27 = vmul.f32 %v1450_v25, %v573_v17  ;;  %vm591_vm15 = vweird.f32 %v1450_v25 }
 0x658   :  { %vm592_vm2 = vmor %vm590_vm1, %vm591_vm15 }
 0x659   :  { %v586_v28 = vmul.f32 %v1450_v25, %v585_v27  ;;  %v583_v29 = vsel %vm582_vm14, %v1448_v15, %v579_v26 }
 0x65a   :  { %v594_v33 = vmul.f32 %v583_v29, %v560_v2 }
 0x65b   :  { %v587_v30 = vmul.f32 0.5, %v586_v28 }
 0x65c   :  { %v597_v37 = vmul.f32 %v1783_v32, %v594_v33 }
 0x65d   :  { %v588_v31 = vsub.f32 1.5, %v587_v30 }
 0x65e   :  { %v600_v39 = vadd.f32 %v1785_v36, %v597_v37 }
 0x65f   :  { %v589_v34 = vmul.f32 %v1450_v25, %v588_v31 }
 0x661   :  { %v593_v35 = vsel %vm592_vm2, %v1450_v25, %v589_v34 }
 0x662   :  { %v595_v38 = vmul.f32 %v593_v35, %v561_v6 }
 0x664   :  { %v598_v51 = vmul.f32 %v1783_v32, %v595_v38 }
 0x666   :  { %v601_v40 = vadd.f32 %v1785_v36, %v598_v51 }
 0x668   :  { %v602_v52 = vpack.c.bf16 %v601_v40, %v600_v39 }
 0x66a   :  { %1327 = vmatmul.msk.bf16.vlgmr.msrb.gmra.mxu0 %vm222_vm8, %v602_v52 }
 0x6e7   :  { %v628_v47 = vpop.f32.mrf.mxu0 }
 0x6e8   :  { %v629_v48 = vadd.f32 %v1800_v45, %v628_v47 }
 0x6ea   :  { %v633_v49 = vmul.f32 %v629_v48, %v629_v48 }
 0x6ec   :  { %v635_v50 = vmul.f32 %v633_v49, %v629_v48 }
 0x6ee   :  { %v637_v53 = vmul.f32 0.044715, %v635_v50 }
 0x6ef   :  { %v630_v54 = vpop.f32.mrf.mxu0 }
 0x6f0   :  { %v639_v55 = vadd.f32 %v637_v53, %v629_v48  ;;  %v631_v58 = vadd.f32 %v1800_v45, %v630_v54 }
 0x6f2   :  { %v641_v60 = vmul.f32 0.7978846, %v639_v55  ;;  %v634_v61 = vmul.f32 %v631_v58, %v631_v58 }
 0x6f4   :  { %v636_v56 = vmul.f32 %v634_v61, %v631_v58  ;;  %1451 = vtanh.f32 %v641_v60 }
 0x6f6   :  { %v638_v63 = vmul.f32 0.044715, %v636_v56 }
 0x6f8   :  { %v640_v1 = vadd.f32 %v638_v63, %v631_v58 }
 0x6fa   :  { %v642_v2 = vmul.f32 0.7978846, %v640_v1  ;;  %v1452_v3 = vpop.eup %1451  ;;  %v1821_v1 = vld [vmem:[#allocation8 + $0x9] ss:$0 sm:$0xff] }
 0x6fb   :  { %v645_v57 = vadd.f32 1.0, %v1452_v3 }
 0x6fc   :  { %1453 = vtanh.f32 %v642_v2 }
 0x6fd   :  { %v647_v5 = vmul.f32 0.5, %v645_v57 }
 0x6ff   :  { %v649_v8 = vmul.f32 %v647_v5, %v629_v48 }
 0x702   :  { %v1454_v4 = vpop.eup %1453 }
 0x703   :  { %v646_v6 = vadd.f32 1.0, %v1454_v4  ;;  %v1823_v4 = vld [vmem:[#allocation8 + $0xa] ss:$0 sm:$0xff] }
 0x705   :  { %v648_v7 = vmul.f32 0.5, %v646_v6 }
 0x707   :  { %v650_v10 = vmul.f32 %v648_v7, %v631_v58 }
 0x709   :  { %v651_v0 = vpack.c.bf16 %v650_v10, %v649_v8 }
 0x70b   :  { %1344 = vmatmul.msk.bf16.vlgmr.msrb.gmra.mxu1 %vm677_vm3, %v651_v0 }
 0x788   :  { %v690_v13 = vpop.f32.mrf.mxu1 }
 0x789   :  { %v691_v14 = vadd.f32 %v1809_v12, %v690_v13 }
 0x78b   :  { %v695_v15 = vadd.f32 %v691_v14, %v600_v39 }
 0x78d   :  { %v697_v17 = vsel %vm222_vm8, %v695_v15, 0.0 }
 0x78e   :  { %698 = vadd.xlane.f32.xlu0 %v697_v17 }
 0x790   :  { %v692_v18 = vpop.f32.mrf.mxu1 }
 0x791   :  { %v693_v19 = vadd.f32 %v1809_v12, %v692_v18 }
 0x793   :  { %v696_v22 = vadd.f32 %v693_v19, %v601_v40 }
 0x795   :  { %v700_v24 = vsel %vm222_vm8, %v696_v22, 0.0 }
 0x796   :  { %701 = vadd.xlane.f32.xlu1 %v700_v24 }
 0x801   :  { %v699_v25 = vpop.xlane.xlu0 %698 }
 0x802   :  { %v703_v26 = vmul.f32 %v699_v25, %v1769_v62 }
 0x804   :  { %v705_v27 = vsub.f32 %v695_v15, %v703_v26 }
 0x806   :  { %v707_v28 = vmul.f32 %v705_v27, %v705_v27 }
 0x808   :  { %v709_v29 = vsel %vm222_vm8, %v707_v28, 0.0 }
 0x809   :  { %v702_v30 = vpop.xlane.xlu1 %701  ;;  %710 = vadd.xlane.f32.xlu0 %v709_v29 }
 0x80a   :  { %v704_v31 = vmul.f32 %v702_v30, %v1769_v62 }
 0x80c   :  { %v706_v33 = vsub.f32 %v696_v22, %v704_v31 }
 0x80e   :  { %v708_v34 = vmul.f32 %v706_v33, %v706_v33 }
 0x810   :  { %v712_v35 = vsel %vm222_vm8, %v708_v34, 0.0 }
 0x811   :  { %713 = vadd.xlane.f32.xlu1 %v712_v35 }
 0x87c   :  { %v711_v37 = vpop.xlane.xlu0 %710 }
 0x87d   :  { %v715_v38 = vmul.f32 %v711_v37, %v1769_v62 }
 0x87f   :  { %v717_v51 = vadd.f32 1e-12, %v715_v38 }
 0x881   :  { %1455 = vrsqrt.f32 %v717_v51  ;;  %vm725_vm5 = vweird.f32 %v717_v51 }
 0x884   :  { %v714_v39 = vpop.xlane.xlu1 %713 }
 0x885   :  { %v716_v40 = vmul.f32 %v714_v39, %v1769_v62 }
 0x887   :  { %v1456_v52 = vpop.eup %1455  ;;  %v718_v47 = vadd.f32 1e-12, %v716_v40 }
 0x888   :  { %v720_v48 = vmul.f32 %v1456_v52, %v717_v51  ;;  %vm726_vm4 = vweird.f32 %v1456_v52 }
 0x889   :  { %1457 = vrsqrt.f32 %v718_v47  ;;  %vm727_vm6 = vmor %vm725_vm5, %vm726_vm4  ;;  %vm735_vm11 = vweird.f32 %v718_v47 }
 0x88a   :  { %v721_v49 = vmul.f32 %v1456_v52, %v720_v48 }
 0x88c   :  { %v722_v50 = vmul.f32 0.5, %v721_v49 }
 0x88e   :  { %v723_v53 = vsub.f32 1.5, %v722_v50 }
 0x88f   :  { %v1458_v54 = vpop.eup %1457 }
 0x890   :  { %v724_v55 = vmul.f32 %v1456_v52, %v723_v53  ;;  %v730_v58 = vmul.f32 %v1458_v54, %v718_v47  ;;  %vm736_vm7 = vweird.f32 %v1458_v54 }
 0x891   :  { %vm737_vm12 = vmor %vm735_vm11, %vm736_vm7  ;;  %vm1205_vm7 = vcmask 1041409  }
 0x892   :  { %v731_v60 = vmul.f32 %v1458_v54, %v730_v58  ;;  %v728_v61 = vsel %vm727_vm6, %v1456_v52, %v724_v55 }
 0x893   :  { %v739_v2 = vmul.f32 %v728_v61, %v705_v27 }
 0x894   :  { %v732_v56 = vmul.f32 0.5, %v731_v60 }
 0x895   :  { %v742_v5 = vmul.f32 %v1821_v1, %v739_v2 }
 0x896   :  { %v733_v63 = vsub.f32 1.5, %v732_v56 }
 0x897   :  { %v1828_v8 = vadd.f32 %v1823_v4, %v742_v5 }
 0x898   :  { %v734_v3 = vmul.f32 %v1458_v54, %v733_v63 }
 0x89a   :  { %v738_v57 = vsel %vm737_vm12, %v1458_v54, %v734_v3 }
 0x89b   :  { %v740_v6 = vmul.f32 %v738_v57, %v706_v33 }
 0x89d   :  { %v743_v7 = vmul.f32 %v1821_v1, %v740_v6 }
 0x89f   :  { %v1831_v10 = vadd.f32 %v1823_v4, %v743_v7 }
 0x8a1   :  { %v747_v0 = vpack.c.bf16 %v1831_v10, %v1828_v8 }
 0x8a3   :  { %1345 = vmatmul.msk.bf16.vlgmr.msrb.gmra.mxu2 %vm222_vm8, %v747_v0 }
 0x926   :  { %v760_v13 = vpop.f32.mrf.mxu2 }
 0x927   :  { %v761_v14 = vadd.f32 %v1691_v59, %v760_v13 }
 0x929   :  { %v765_v15 = vpack.c.bf16 %v761_v14, %v761_v14 }
 0x92b   :  { %v768_v17 = vunpack.c.l.b16 %v765_v15 }
 0x92d   :  { %v1837_v18 = vpack.c.b16 %v768_v17, %v768_v17 }
 0x92e   :  { %v762_v19 = vpop.f32.mrf.mxu2 }
 0x92f   :  { %v763_v22 = vadd.f32 %v1691_v59, %v762_v19  ;;  %885 = vrot.lane.b32.xlu1 %v1837_v18, %s1628_s2  ;;  %770 = vrot.lane.b32.xlu2 %v1837_v18, %s1629_s3 }
 0x931   :  { %v766_v24 = vpack.c.bf16 %v763_v22, %v763_v22 }
 0x933   :  { %v792_v25 = vunpack.c.l.b16 %v766_v24 }
 0x935   :  { %v793_v26 = vpack.c.b16 %v792_v25, %v792_v25 }
 0x937   :  { %794 = vrot.lane.b32.xlu0 %v793_v26, %s1629_s3  ;;  %906 = vrot.lane.b32.xlu1 %v793_v26, %s1630_s13 }
 0x938   :  { %883 = vrot.lane.b32.xlu2 %v1837_v18, %s1630_s13 }
 0x93f   :  { %908 = vrot.lane.b32.xlu0 %v793_v26, %s1628_s2 }
 0x989   :  { %v771_v27 = vpop.permute.xlu2 %770 }
 0x98a   :  { %v776_v59 = vsel %vm125_vm0, %v771_v27, 0 }
 0x98b   :  { %785 = vmatpush.bf16.xpose.msrb.mxu3 %v776_v59 }
 0x992   :  { %1346 = vmatmul.msk.bf16.vlgmr.msrb.gmra.mxu3 %vm125_vm0, %v765_v15  ;;  %v884_v30 = vpop.permute.xlu2 %883 }
 0x9a1   :  { %v886_v28 = vpop.permute.xlu1 %885 }
 0x9a2   :  { %v891_v29 = vsel %vm125_vm0, %v886_v28, 0 }
 0x9a3   :  { %900 = vmatpush.bf16.xpose.msra.mxu3 %v891_v29 }
 0x9a9   :  { %v795_v31 = vpop.permute.xlu0 %794  ;;  %v907_v37 = vpop.permute.xlu1 %906 }
 0x9aa   :  { %v800_v33 = vsel %vm125_vm0, %v795_v31, 0  ;;  %1350 = vmatmul.msk.bf16.vlgmr.msra.gmra.mxu3 %vm125_vm0, %v884_v30 }
 0x9ab   :  { %1012 = vmatpush.bf16.msrb.mxu3 %v1754_v23  ;;  %809 = vmatpush.bf16.xpose.msra.mxu0 %v800_v33 }
 0x9b1   :  { %v909_v34 = vpop.permute.xlu0 %908 }
 0x9b2   :  { %v914_v35 = vsel %vm125_vm0, %v909_v34, 0  ;;  %1347 = vmatmul.msk.bf16.vlgmr.msra.gmra.mxu0 %vm125_vm0, %v766_v24 }
 0x9b3   :  { %923 = vmatpush.bf16.xpose.msrb.mxu0 %v914_v35 }
 0x9bb   :  { %1034 = vmatpush.bf16.msra.mxu0 %v1751_v21 }
 0x9c2   :  { %1351 = vmatmul.msk.bf16.vlgmr.msrb.gmra.mxu0 %vm125_vm0, %v907_v37 }
 0xa15   :  { %v787_v38 = vpop.f32.mrf.mxu3 }
 0xa16   :  { %v788_v23 = vadd.f32 %v1719_v16, %v787_v38 }
 0xa18   :  { %v815_v51 = vsel %vm296_vm9, %v788_v23, -inf }
 0xa19   :  { %816 = vmax.xlane.f32.xlu2 %v815_v51 }
 0xa1d   :  { %v789_v39 = vpop.f32.mrf.mxu3 }
 0xa2d   :  { %v902_v40 = vpop.f32.mrf.mxu3 }
 0xa2e   :  { %v903_v21 = vadd.f32 %v1719_v16, %v902_v40 }
 0xa2f   :  { %v811_v52 = vpop.f32.mrf.mxu0 }
 0xa30   :  { %v812_v47 = vadd.f32 %v1723_v20, %v811_v52  ;;  %v929_v53 = vsel %vm296_vm9, %v903_v21, -inf }
 0xa32   :  { %v818_v48 = vsel %vm296_vm9, %v812_v47, -inf }
 0xa33   :  { %819 = vmax.xlane.f32.xlu0 %v818_v48 }
 0xa35   :  { %v904_v49 = vpop.f32.mrf.mxu3 }
 0xa37   :  { %v813_v50 = vpop.f32.mrf.mxu0 }
 0xa3b   :  { %930 = vmax.xlane.f32.xlu0 %v929_v53 }
 0xa3f   :  { %v925_v54 = vpop.f32.mrf.mxu0 }
 0xa40   :  { %v926_v55 = vadd.f32 %v1723_v20, %v925_v54 }
 0xa42   :  { %v932_v58 = vsel %vm296_vm9, %v926_v55, -inf }
 0xa43   :  { %933 = vmax.xlane.f32.xlu1 %v932_v58 }
 0xa47   :  { %v927_v60 = vpop.f32.mrf.mxu0 }
 0xa4f   :  { %860 = vrot.lane.b32.xlu0 %v793_v26, %s1624_s9 }
 0xa57   :  { %974 = vrot.lane.b32.xlu0 %v793_v26, %s1631_s14 }
 0xa8c   :  { %v817_v61 = vpop.xlane.xlu2 %816 }
 0xa8d   :  { %v821_v56 = vsub.f32 %v788_v23, %v817_v61 }
 0xa8f   :  { %v823_v63 = vmul.f32 1.442695, %v821_v56 }
 0xa91   :  { %1459 = vpow2.f32 %v823_v63 }
 0xa97   :  { %v1460_v16 = vpop.eup %1459 }
 0xa98   :  { %v827_v2 = vsel %vm296_vm9, %v1460_v16, 0.0 }
 0xa99   :  { %828 = vadd.xlane.f32.xlu1 %v827_v2 }
 0xaa6   :  { %v820_v3 = vpop.xlane.xlu0 %819 }
 0xaa7   :  { %v822_v57 = vsub.f32 %v812_v47, %v820_v3 }
 0xaa9   :  { %v825_v5 = vmul.f32 1.442695, %v822_v57 }
 0xaab   :  { %1461 = vpow2.f32 %v825_v5 }
 0xaae   :  { %v931_v20 = vpop.xlane.xlu0 %930 }
 0xaaf   :  { %v935_v6 = vsub.f32 %v903_v21, %v931_v20 }
 0xab1   :  { %v1462_v7 = vpop.eup %1461  ;;  %v937_v0 = vmul.f32 1.442695, %v935_v6 }
 0xab2   :  { %v830_v13 = vsel %vm296_vm9, %v1462_v7, 0.0 }
 0xab3   :  { %1463 = vpow2.f32 %v937_v0  ;;  %831 = vadd.xlane.f32.xlu2 %v830_v13 }
 0xab6   :  { %v934_v14 = vpop.xlane.xlu1 %933 }
 0xab7   :  { %v936_v15 = vsub.f32 %v926_v55, %v934_v14 }
 0xab9   :  { %v1464_v17 = vpop.eup %1463  ;;  %v939_v19 = vmul.f32 1.442695, %v936_v15 }
 0xaba   :  { %v941_v22 = vsel %vm296_vm9, %v1464_v17, 0.0 }
 0xabb   :  { %1465 = vpow2.f32 %v939_v19  ;;  %942 = vadd.xlane.f32.xlu1 %v941_v22 }
 0xac1   :  { %v1466_v24 = vpop.eup %1465  ;;  %v861_v25 = vpop.permute.xlu0 %860 }
 0xac2   :  { %v866_v26 = vsel %vm326_vm10, %v861_v25, 0  ;;  %v944_v27 = vsel %vm296_vm9, %v1466_v24, 0.0 }
 0xac3   :  { %875 = vmatpush.bf16.msra.mxu2 %v866_v26  ;;  %945 = vadd.xlane.f32.xlu1 %v944_v27 }
 0xac9   :  { %v975_v59 = vpop.permute.xlu0 %974 }
 0xaca   :  { %v980_v28 = vsel %vm326_vm10, %v975_v59, 0 }
 0xacb   :  { %839 = vrot.lane.b32.xlu2 %v1837_v18, %s1624_s9  ;;  %989 = vmatpush.bf16.msrb.mxu2 %v980_v28 }
 0xadc   :  { %953 = vrot.lane.b32.xlu1 %v1837_v18, %s1631_s14 }
 0xb0c   :  { %v829_v29 = vpop.xlane.xlu1 %828 }
 0xb0d   :  { %1467 = vrcp.f32 %v829_v29 }
 0xb13   :  { %v1468_v31 = vpop.eup %1467 }
 0xb14   :  { %v835_v34 = vmul.f32 %v1468_v31, %v1460_v16 }
 0xb16   :  { %v837_v39 = vpack.c.bf16 %v835_v34, %v835_v34 }
 0xb26   :  { %v832_v30 = vpop.xlane.xlu2 %831 }
 0xb27   :  { %1469 = vrcp.f32 %v832_v30 }
 0xb2d   :  { %v1470_v33 = vpop.eup %1469 }
 0xb2e   :  { %v836_v35 = vmul.f32 %v1470_v33, %v1462_v7  ;;  %v943_v37 = vpop.xlane.xlu1 %942  ;;  %v840_v38 = vpop.permute.xlu2 %839 }
 0xb2f   :  { %v845_v23 = vsel %vm326_vm10, %v840_v38, 0 }
 0xb30   :  { %v838_v51 = vpack.c.bf16 %v836_v35, %v836_v35  ;;  %854 = vmatpush.bf16.msra.mxu1 %v845_v23 }
 0xb32   :  { %1349 = vmatmul.msk.bf16.vlgmr.msra.gmra.mxu2 %vm296_vm9, %v838_v51 }
 0xb33   :  { %1348 = vmatmul.msk.bf16.vlgmr.msra.gmra.mxu1 %vm296_vm9, %v837_v39  ;;  %1137 = vmatpush.bf16.msra.mxu2 %v1792_v42 }
 0xb36   :  { %v946_v18 = vpop.xlane.xlu1 %945 }
 0xb37   :  { %1471 = vrcp.f32 %v946_v18  ;;  %1138 = vmatpush.bf16.msra.mxu2 %v1795_v43 }
 0xb38   :  { %1473 = vrcp.f32 %v943_v37 }
 0xb3b   :  { %1139 = vmatpush.bf16.msra.mxu2 %v1798_v44 }
 0xb3d   :  { %v1472_v40 = vpop.eup %1471 }
 0xb3e   :  { %v950_v52 = vmul.f32 %v1472_v40, %v1466_v24  ;;  %v1474_v48 = vpop.eup %1473 }
 0xb3f   :  { %1140 = vmatpush.bf16.msra.mxu2 %v1803_v46  ;;  %v949_v49 = vmul.f32 %v1474_v48, %v1464_v17 }
 0xb40   :  { %v952_v47 = vpack.c.bf16 %v950_v52, %v950_v52 }
 0xb41   :  { %v951_v42 = vpack.c.bf16 %v949_v49, %v949_v49 }
 0xb42   :  { %1353 = vmatmul.msk.bf16.vlgmr.msrb.gmra.mxu2 %vm296_vm9, %v952_v47 }
 0xb4e   :  { %v954_v21 = vpop.permute.xlu1 %953 }
 0xb4f   :  { %v959_v50 = vsel %vm326_vm10, %v954_v21, 0 }
 0xb50   :  { %968 = vmatpush.bf16.msrb.mxu1 %v959_v50 }
 0xb53   :  { %1352 = vmatmul.msk.bf16.vlgmr.msrb.gmra.mxu1 %vm296_vm9, %v951_v42 }
 0xb54   :  { %1103 = vmatpush.bf16.msra.mxu1 %v1775_v9 }
 0xb58   :  { %1104 = vmatpush.bf16.msra.mxu1 %v1779_v11 }
 0xbb0   :  { %v856_v43 = vpop.f32.mrf.mxu1 }
 0xbb1   :  { %v881_v44 = vpack.c.bf16 %v856_v43, %v856_v43 }
 0xbb3   :  { %v1021_v54 = vunpack.c.l.b16 %v881_v44 }
 0xbb5   :  { %v877_v46 = vpop.f32.mrf.mxu2 }
 0xbb6   :  { %v882_v53 = vpack.c.bf16 %v877_v46, %v877_v46 }
 0xbb8   :  { %v1022_v55 = vunpack.c.l.b16 %v882_v53  ;;  %v858_v58 = vpop.f32.mrf.mxu1 }
 0xbba   :  { %v1023_v60 = vpack.c.b16 %v1022_v55, %v1021_v54 }
 0xbbc   :  { %1355 = vmatmul.msk.bf16.vlgmr.msra.gmra.mxu0 %vm125_vm0, %v1023_v60 }
 0xbbd   :  { %v879_v61 = vpop.f32.mrf.mxu2 }
 0xbc5   :  { %v991_v56 = vpop.f32.mrf.mxu2 }
 0xbc6   :  { %v996_v16 = vpack.c.bf16 %v991_v56, %v991_v56 }
 0xbc8   :  { %v1000_v3 = vunpack.c.l.b16 %v996_v16 }
 0xbcd   :  { %v993_v63 = vpop.f32.mrf.mxu2 }
 0xbd0   :  { %v970_v2 = vpop.f32.mrf.mxu1 }
 0xbd1   :  { %v995_v9 = vpack.c.bf16 %v970_v2, %v970_v2 }
 0xbd3   :  { %v999_v57 = vunpack.c.l.b16 %v995_v9 }
 0xbd5   :  { %v1001_v5 = vpack.c.b16 %v1000_v3, %v999_v57 }
 0xbd7   :  { %1354 = vmatmul.msk.bf16.vlgmr.msrb.gmra.mxu3 %vm125_vm0, %v1001_v5 }
 0xbd8   :  { %v972_v11 = vpop.f32.mrf.mxu1 }
 0xc39   :  { %v1036_v20 = vpop.f32.mrf.mxu0 }
 0xc41   :  { %v1038_v15 = vpop.f32.mrf.mxu0 }
 0xc5a   :  { %v1014_v6 = vpop.f32.mrf.mxu3 }
 0xc5b   :  { %v1037_v7 = vadd.f32 %v1036_v20, %v1014_v6 }
 0xc5d   :  { %v1041_v0 = vadd.f32 %v1761_v41, %v1037_v7 }
 0xc5f   :  { %v1043_v13 = vadd.f32 %v1041_v0, %v1828_v8 }
 0xc61   :  { %v1045_v14 = vsel %vm222_vm8, %v1043_v13, 0.0 }
 0xc62   :  { %1046 = vadd.xlane.f32.xlu2 %v1045_v14  ;;  %v1016_v17 = vpop.f32.mrf.mxu3 }
 0xc63   :  { %v1039_v19 = vadd.f32 %v1038_v15, %v1016_v17 }
 0xc65   :  { %v1042_v22 = vadd.f32 %v1761_v41, %v1039_v19 }
 0xc67   :  { %v1044_v24 = vadd.f32 %v1042_v22, %v1831_v10 }
 0xc69   :  { %v1048_v25 = vsel %vm222_vm8, %v1044_v24, 0.0 }
 0xc6a   :  { %1049 = vadd.xlane.f32.xlu0 %v1048_v25 }
 0xcd5   :  { %v1047_v26 = vpop.xlane.xlu2 %1046 }
 0xcd6   :  { %v1051_v27 = vmul.f32 %v1047_v26, %v1769_v62 }
 0xcd8   :  { %v1053_v59 = vsub.f32 %v1043_v13, %v1051_v27 }
 0xcda   :  { %v1055_v28 = vmul.f32 %v1053_v59, %v1053_v59 }
 0xcdc   :  { %v1057_v8 = vsel %vm222_vm8, %v1055_v28, 0.0 }
 0xcdd   :  { %1058 = vadd.xlane.f32.xlu1 %v1057_v8  ;;  %v1050_v29 = vpop.xlane.xlu0 %1049 }
 0xcde   :  { %v1052_v30 = vmul.f32 %v1050_v29, %v1769_v62 }
 0xce0   :  { %v1054_v31 = vsub.f32 %v1044_v24, %v1052_v30 }
 0xce2   :  { %v1056_v33 = vmul.f32 %v1054_v31, %v1054_v31 }
 0xce4   :  { %v1060_v41 = vsel %vm222_vm8, %v1056_v33, 0.0 }
 0xce5   :  { %1061 = vadd.xlane.f32.xlu2 %v1060_v41 }
 0xd50   :  { %v1059_v10 = vpop.xlane.xlu1 %1058 }
 0xd51   :  { %v1063_v34 = vmul.f32 %v1059_v10, %v1769_v62 }
 0xd53   :  { %v1065_v35 = vadd.f32 1e-12, %v1063_v34 }
 0xd55   :  { %1475 = vrsqrt.f32 %v1065_v35  ;;  %vm1073_vm9 = vweird.f32 %v1065_v35 }
 0xd58   :  { %v1062_v37 = vpop.xlane.xlu2 %1061 }
 0xd59   :  { %v1064_v38 = vmul.f32 %v1062_v37, %v1769_v62 }
 0xd5b   :  { %v1476_v23 = vpop.eup %1475  ;;  %v1066_v51 = vadd.f32 1e-12, %v1064_v38 }
 0xd5c   :  { %v1068_v39 = vmul.f32 %v1476_v23, %v1065_v35  ;;  %vm1074_vm0 = vweird.f32 %v1476_v23 }
 0xd5d   :  { %1477 = vrsqrt.f32 %v1066_v51  ;;  %vm1075_vm10 = vmor %vm1073_vm9, %vm1074_vm0  ;;  %vm1083_vm14 = vweird.f32 %v1066_v51 }
 0xd5e   :  { %v1069_v18 = vmul.f32 %v1476_v23, %v1068_v39 }
 0xd60   :  { %v1070_v40 = vmul.f32 0.5, %v1069_v18 }
 0xd62   :  { %v1071_v52 = vsub.f32 1.5, %v1070_v40 }
 0xd63   :  { %v1478_v47 = vpop.eup %1477 }
 0xd64   :  { %v1072_v48 = vmul.f32 %v1476_v23, %v1071_v52  ;;  %v1078_v49 = vmul.f32 %v1478_v47, %v1066_v51  ;;  %vm1084_vm13 = vweird.f32 %v1478_v47  ;;  %v1386_v52 = vld [vmem:[#allocation7 + $0x60] sm:$0xff] }
 0xd65   :  { %vm1085_vm15 = vmor %vm1083_vm14, %vm1084_vm13  ;;  %1229 = vmatpush.bf16.msra.mxu3 %v1386_v52 }
 0xd66   :  { %v1079_v21 = vmul.f32 %v1478_v47, %v1078_v49  ;;  %v1076_v50 = vsel %vm1075_vm10, %v1476_v23, %v1072_v48  ;;  %v1385_v49 = vld [vmem:[#allocation7 + $0x58] sm:$0xff] }
 0xd67   :  { %v1087_v44 = vmul.f32 %v1076_v50, %v1053_v59 }
 0xd68   :  { %v1080_v42 = vmul.f32 0.5, %v1079_v21 }
 0xd69   :  { %v1089_v54 = vmul.f32 %v1783_v32, %v1087_v44  ;;  %1230 = vmatpush.bf16.msra.mxu3 %v1385_v49 }
 0xd6a   :  { %v1081_v43 = vsub.f32 1.5, %v1080_v42 }
 0xd6b   :  { %v1091_v60 = vadd.f32 %v1785_v36, %v1089_v54 }
 0xd6c   :  { %v1082_v46 = vmul.f32 %v1478_v47, %v1081_v43 }
 0xd6e   :  { %v1086_v53 = vsel %vm1085_vm15, %v1478_v47, %v1082_v46 }
 0xd6f   :  { %v1088_v55 = vmul.f32 %v1086_v53, %v1054_v31 }
 0xd71   :  { %v1090_v58 = vmul.f32 %v1783_v32, %v1088_v55 }
 0xd73   :  { %v1092_v61 = vadd.f32 %v1785_v36, %v1090_v58 }
 0xd75   :  { %v1093_v56 = vpack.c.bf16 %v1092_v61, %v1091_v60 }
 0xd77   :  { %1356 = vmatmul.msk.bf16.vlgmr.msra.gmra.mxu1 %vm222_vm8, %v1093_v56 }
 0xdf4   :  { %v1106_v63 = vpop.f32.mrf.mxu1 }
 0xdf5   :  { %v1107_v16 = vadd.f32 %v1800_v45, %v1106_v63 }
 0xdf7   :  { %v1111_v2 = vmul.f32 %v1107_v16, %v1107_v16 }
 0xdf9   :  { %v1113_v9 = vmul.f32 %v1111_v2, %v1107_v16 }
 0xdfb   :  { %v1115_v3 = vmul.f32 0.044715, %v1113_v9 }
 0xdfc   :  { %v1108_v57 = vpop.f32.mrf.mxu1 }
 0xdfd   :  { %v1117_v5 = vadd.f32 %v1115_v3, %v1107_v16  ;;  %v1109_v11 = vadd.f32 %v1800_v45, %v1108_v57 }
 0xdff   :  { %v1119_v20 = vmul.f32 0.7978846, %v1117_v5  ;;  %v1112_v6 = vmul.f32 %v1109_v11, %v1109_v11 }
 0xe01   :  { %v1114_v32 = vmul.f32 %v1112_v6, %v1109_v11  ;;  %1479 = vtanh.f32 %v1119_v20 }
 0xe03   :  { %v1116_v7 = vmul.f32 0.044715, %v1114_v32 }
 0xe05   :  { %v1118_v0 = vadd.f32 %v1116_v7, %v1109_v11 }
 0xe07   :  { %v1120_v36 = vmul.f32 0.7978846, %v1118_v0  ;;  %v1480_v13 = vpop.eup %1479 }
 0xe08   :  { %v1123_v14 = vadd.f32 1.0, %v1480_v13  ;;  %v1388_v13 = vld [vmem:[#allocation7 + $0x70] sm:$0xff] }
 0xe09   :  { %1481 = vtanh.f32 %v1120_v36  ;;  %1260 = vmatpush.bf16.msrb.mxu0 %v1388_v13 }
 0xe0a   :  { %v1125_v17 = vmul.f32 0.5, %v1123_v14  ;;  %v1387_v14 = vld [vmem:[#allocation7 + $0x68] sm:$0xff] }
 0xe0c   :  { %v1127_v24 = vmul.f32 %v1125_v17, %v1107_v16 }
 0xe0d   :  { %1261 = vmatpush.bf16.msrb.mxu0 %v1387_v14 }
 0xe0f   :  { %v1482_v15 = vpop.eup %1481 }
 0xe10   :  { %v1124_v19 = vadd.f32 1.0, %v1482_v15  ;;  %v1421_v15 = vld [vmem:[#allocation8 + $0xb] ss:$0 sm:$0xff] }
 0xe12   :  { %v1126_v22 = vmul.f32 0.5, %v1124_v19 }
 0xe14   :  { %v1128_v25 = vmul.f32 %v1126_v22, %v1109_v11 }
 0xe16   :  { %v1129_v26 = vpack.c.bf16 %v1128_v25, %v1127_v24  ;;  %v1422_v24 = vld [vmem:[#allocation8 + $0xc] ss:$0 sm:$0xff] }
 0xe18   :  { %1357 = vmatmul.msk.bf16.vlgmr.msra.gmra.mxu2 %vm677_vm3, %v1129_v26 }
 0xe9b   :  { %v1142_v45 = vpop.f32.mrf.mxu2 }
 0xe9c   :  { %v1143_v27 = vadd.f32 %v1809_v12, %v1142_v45 }
 0xe9e   :  { %v1147_v59 = vadd.f32 %v1143_v27, %v1091_v60 }
 0xea0   :  { %v1149_v28 = vsel %vm222_vm8, %v1147_v59, 0.0 }
 0xea1   :  { %1150 = vadd.xlane.f32.xlu2 %v1149_v28 }
 0xea3   :  { %v1144_v8 = vpop.f32.mrf.mxu2 }
 0xea4   :  { %v1145_v29 = vadd.f32 %v1809_v12, %v1144_v8 }
 0xea6   :  { %v1148_v30 = vadd.f32 %v1145_v29, %v1092_v61 }
 0xea8   :  { %v1152_v31 = vsel %vm222_vm8, %v1148_v30, 0.0 }
 0xea9   :  { %1153 = vadd.xlane.f32.xlu0 %v1152_v31 }
 0xf14   :  { %v1151_v33 = vpop.xlane.xlu2 %1150 }
 0xf15   :  { %v1155_v41 = vmul.f32 %v1151_v33, %v1769_v62 }
 0xf17   :  { %v1157_v10 = vsub.f32 %v1147_v59, %v1155_v41 }
 0xf19   :  { %v1159_v34 = vmul.f32 %v1157_v10, %v1157_v10 }
 0xf1b   :  { %v1161_v35 = vsel %vm222_vm8, %v1159_v34, 0.0 }
 0xf1c   :  { %v1154_v37 = vpop.xlane.xlu0 %1153  ;;  %1162 = vadd.xlane.f32.xlu2 %v1161_v35 }
 0xf1d   :  { %v1156_v38 = vmul.f32 %v1154_v37, %v1769_v62 }
 0xf1f   :  { %v1158_v23 = vsub.f32 %v1148_v30, %v1156_v38 }
 0xf21   :  { %v1160_v51 = vmul.f32 %v1158_v23, %v1158_v23 }
 0xf23   :  { %v1164_v39 = vsel %vm222_vm8, %v1160_v51, 0.0 }
 0xf24   :  { %1165 = vadd.xlane.f32.xlu0 %v1164_v39 }
 0xf8f   :  { %v1163_v12 = vpop.xlane.xlu2 %1162 }
 0xf90   :  { %v1167_v18 = vmul.f32 %v1163_v12, %v1769_v62 }
 0xf92   :  { %v1169_v40 = vadd.f32 1e-12, %v1167_v18 }
 0xf94   :  { %1483 = vrsqrt.f32 %v1169_v40  ;;  %vm1177_vm2 = vweird.f32 %v1169_v40 }
 0xf97   :  { %v1166_v47 = vpop.xlane.xlu0 %1165 }
 0xf98   :  { %v1168_v48 = vmul.f32 %v1166_v47, %v1769_v62 }
 0xf9a   :  { %v1484_v21 = vpop.eup %1483  ;;  %v1170_v50 = vadd.f32 1e-12, %v1168_v48 }
 0xf9b   :  { %v1172_v42 = vmul.f32 %v1484_v21, %v1169_v40  ;;  %vm1178_vm1 = vweird.f32 %v1484_v21 }
 0xf9c   :  { %1485 = vrsqrt.f32 %v1170_v50  ;;  %vm1179_vm3 = vmor %vm1177_vm2, %vm1178_vm1  ;;  %vm1187_vm5 = vweird.f32 %v1170_v50 }
 0xf9d   :  { %v1173_v43 = vmul.f32 %v1484_v21, %v1172_v42 }
 0xf9f   :  { %v1174_v44 = vmul.f32 0.5, %v1173_v43 }
 0xfa1   :  { %v1175_v46 = vsub.f32 1.5, %v1174_v44 }
 0xfa2   :  { %v1486_v53 = vpop.eup %1485 }
 0xfa3   :  { %v1176_v54 = vmul.f32 %v1484_v21, %v1175_v46  ;;  %v1182_v55 = vmul.f32 %v1486_v53, %v1170_v50  ;;  %vm1188_vm4 = vweird.f32 %v1486_v53 }
 0xfa4   :  { %vm1189_vm6 = vmor %vm1187_vm5, %vm1188_vm4 }
 0xfa5   :  { %v1180_v58 = vsel %vm1179_vm3, %v1484_v21, %v1176_v54  ;;  %v1183_v60 = vmul.f32 %v1486_v53, %v1182_v55 }
 0xfa6   :  { %v1191_v56 = vmul.f32 %v1180_v58, %v1157_v10 }
 0xfa7   :  { %v1184_v61 = vmul.f32 0.5, %v1183_v60 }
 0xfa8   :  { %v1193_v16 = vmul.f32 %v1821_v1, %v1191_v56 }
 0xfa9   :  { %v1185_v62 = vsub.f32 1.5, %v1184_v61 }
 0xfaa   :  { %v1195_v3 = vadd.f32 %v1823_v4, %v1193_v16 }
 0xfab   :  { %v1186_v63 = vmul.f32 %v1486_v53, %v1185_v62 }
 0xfac   :  { %v1197_v11 = vpack.c.bf16 %v1195_v3, %v1195_v3 }
 0xfad   :  { %v1190_v2 = vsel %vm1189_vm6, %v1486_v53, %v1186_v63 }
 0xfae   :  { %v1192_v9 = vmul.f32 %v1190_v2, %v1158_v23  ;;  %v1202_v32 = vunpack.c.l.b16 %v1197_v11 }
 0xfb0   :  { %v1194_v57 = vmul.f32 %v1821_v1, %v1192_v9 }
 0xfb2   :  { %v1196_v5 = vadd.f32 %v1823_v4, %v1194_v57 }
 0xfb4   :  { %v1198_v20 = vpack.c.bf16 %v1196_v5, %v1196_v5 }
 0xfb6   :  { %v1203_v6 = vunpack.c.l.b16 %v1198_v20 }
 0xfb8   :  { %v1204_v7 = vrot.slane %v1203_v6, 7 }
 0xfba   :  { %v1206_v0 = vsel %vm1205_vm7, %v1204_v7, %v1202_v32 }
 0xfbb   :  { %v1207_v36 = vpack.c.b16 %v1206_v0, %v1206_v0 }
 0xfbd   :  { %1366 = vmatmul.msk.bf16.vlgmr.msra.gmra.mxu3 %vm222_vm8, %v1207_v36 }
0x1040   :  { %v1232_v17 = vpop.f32.mrf.mxu3 }
0x1041   :  { %v1233_v19 = vadd.f32 %v1421_v15, %v1232_v17 }
0x1043   :  { %1487 = vtanh.f32 %v1233_v19 }
0x1048   :  { %v1234_v1 = vpop.f32.mrf.mxu3 }
0x1049   :  { %v1488_v4 = vpop.eup %1487 }
0x104a   :  { %v1237_v22 = vpack.c.bf16 %v1488_v4, %v1488_v4 }
0x104c   :  { %1375 = vmatmul.msk.bf16.vlgmr.msrb.gmra.mxu0 %vm222_vm8, %v1237_v22 }
0x10c9   :  { %v1263_v25 = vpop.f32.mrf.mxu0 }
0x10ca   :  { %v1264_v26 = vadd.f32 %v1422_v24, %v1263_v25 }
0x10cc   :  { %1267 = vst [vmem:[#allocation10] sm:$0x3] %v1264_v26 }
0x10cd   :  { %1278 = dma.vmem_to_hbm [thread:$0]  %s1274_s16, 32, %s1276_s19, [#allocation4]  }
0x10d1   :  { %v1265_v45 = vpop.f32.mrf.mxu0 }
0x10d2   :  { %1615 = dma.done.wait [#allocation4], 32  }
0x10d3   :  { %1616 = vsyncadd [#allocation4], 4294967264 }
0x10d4   :  { %1283 = vsyncpa [#allocation3], 1 }
0x10d5   :  { %1284 = vsyncpa [#allocation6], 1 }
0x10d6   :  { %1285 = vsyncpa [#allocation9], 1 }
0x10d7   :  { %1286 = vsyncpa [#allocation4], 1 }

</bundles_post_ra>
